<compile_context>
chip_gen: v7x
topology: tpu7x:2x2x1
jax: 0.10.0
libtpu: 0.0.40
codegen_flags: <defaults>
</compile_context>

<pallas_src>
import functools

import jax
import jax.numpy as jnp
from jax import lax
from jax.experimental import pallas as pl
from jax.experimental.pallas import tpu as pltpu


def _round_up(x, m):
    return ((x + m - 1) // m) * m


def _const_spec(shape):
    """Whole-array block whose block index never changes across the grid
    (DMA'd once, stays VMEM-resident)."""
    return pl.BlockSpec(shape, lambda i: (0,) * len(shape))


# ---------------------------------------------------------------------------
# Fused Pallas kernel: backbone (support + query tile) -> prototypes -> scores
# ---------------------------------------------------------------------------
def _protonet_kernel(xs_ref, pw_ref, w1_ref, b1_ref, w2_ref, b2_ref, xq_ref,
                     o_ref, *, dist):
    # xs: (ns_pad, in_dim) bf16          -- support rows (zero padded)
    # pw: (nw_pad, ns_pad) f32           -- one-hot / class-count (zero padded)
    # w1: (in_dim, hidden) bf16 ; b1: (1, hidden) f32
    # w2: (hidden, emb)    bf16 ; b2: (1, emb)    f32
    # xq: (TQ, in_dim) bf16              -- one query-row tile
    # o : (TQ, nw_pad) f32               -- lane-dense score slab
    w1 = w1_ref[...]
    b1 = b1_ref[...]
    w2 = w2_ref[...]
    b2 = b2_ref[...]

    def backbone(x):
        # bf16 MXU matmuls, f32 accumulation / epilogue.
        h = jnp.dot(x, w1, preferred_element_type=jnp.float32)
        h = jnp.maximum(h + b1, 0.0)
        z = jnp.dot(h.astype(w2.dtype), w2, preferred_element_type=jnp.float32)
        return z + b2

    z_support = backbone(xs_ref[...])                       # (ns_pad, emb) f32
    z_query = backbone(xq_ref[...])                          # (TQ, emb)    f32

    # Per-class mean prototypes: averaging matrix @ support embeddings.
    z_proto = jnp.dot(pw_ref[...], z_support,
                      preferred_element_type=jnp.float32)    # (nw_pad, emb) f32

    if dist == "CosineSimilarity":
        # torch CosineSimilarity(dim=2, eps=1e-6): each norm clamped at eps.
        eps = 1e-6
        q2 = jnp.sum(z_query * z_query, axis=1, keepdims=True)   # (TQ, 1)
        p2 = jnp.sum(z_proto * z_proto, axis=1, keepdims=True)   # (nw_pad, 1)
        inv_q = lax.rsqrt(jnp.maximum(q2, eps * eps))             # 1/max(|q|,eps)
        inv_p = lax.rsqrt(jnp.maximum(p2, eps * eps))             # 1/max(|p|,eps)
        # Fold the prototype norm into z_proto (sublane broadcast) so the
        # kernel never transposes a column into a row.
        z_proto_n = z_proto * inv_p                               # (nw_pad, emb)
        dots = lax.dot_general(z_query, z_proto_n,
                               (((1,), (1,)), ((), ())),
                               preferred_element_type=jnp.float32)  # (TQ, nw_pad)
        o_ref[...] = dots * inv_q
    else:
        # Euclidean: scores = -cdist(query, proto) via ||q||^2+||p||^2-2 q.p
        # (clamped at 0; tiny cancellation error possible for near-identical
        #  query/prototype pairs vs torch's direct-difference cdist).
        dots = lax.dot_general(z_query, z_proto,
                               (((1,), (1,)), ((), ())),
                               preferred_element_type=jnp.float32)  # (TQ, nw_pad)
        q2 = jnp.sum(z_query * z_query, axis=1, keepdims=True)     # (TQ, 1)
        p2 = jnp.sum(z_proto * z_proto, axis=1, keepdims=True)     # (nw_pad, 1)
        d2 = jnp.maximum(q2 + p2.T - 2.0 * dots, 0.0)
        o_ref[...] = -jnp.sqrt(d2)


# ---------------------------------------------------------------------------
# Wrapper: one jit, one pallas_call, static n_way / dist / tile size
# ---------------------------------------------------------------------------
@functools.partial(jax.jit, static_argnames=("n_way", "dist", "query_tile"))
def protonet_forward(support_images, support_labels, query_images, params,
                     n_way, dist="CosineSimilarity", query_tile=128):
    """ProtoNet.forward: support/query images -> (n_query, n_way) scores."""
    assert dist in ("CosineSimilarity", "Euclidean")
    w1, b1, w2, b2 = params
    in_dim, hidden = w1.shape
    emb = w2.shape[1]

    ns = support_images.shape[0]
    nq = query_images.shape[0]

    # Padding: support rows to the f32 sublane pack (8), query rows to the
    # tile size, n_way to a lane-dense 128 so the score store is unmasked.
    ns_pad = _round_up(max(ns, 1), 8)
    nq_pad = _round_up(max(nq, 1), query_tile)
    nw_pad = _round_up(max(n_way, 1), 128)

    # Flatten NCHW -> (N, C*H*W) row-major (torch .view(N, -1)); bf16 MXU inputs.
    xs = support_images.reshape(ns, -1).astype(jnp.bfloat16)
    xq = query_images.reshape(nq, -1).astype(jnp.bfloat16)
    xs = jnp.pad(xs, ((0, ns_pad - ns), (0, 0)))
    xq = jnp.pad(xq, ((0, nq_pad - nq), (0, 0)))

    w1_bf = w1.astype(jnp.bfloat16)
    w2_bf = w2.astype(jnp.bfloat16)
    b1_f = b1.reshape(1, hidden).astype(jnp.float32)
    b2_f = b2.reshape(1, emb).astype(jnp.float32)

    # Prototype averaging matrix: one-hot scaled by 1/class_count, guarded
    # against empty classes; zero rows/cols for all padding.
    onehot = jax.nn.one_hot(support_labels, n_way, dtype=jnp.float32).T  # (n_way, ns)
    counts = jnp.sum(onehot, axis=1, keepdims=True)
    proto_w = onehot / jnp.maximum(counts, 1.0)
    proto_w = jnp.pad(proto_w, ((0, nw_pad - n_way), (0, ns_pad - ns)))

    n_tiles = nq_pad // query_tile
    rows = nq_pad + n_tiles * ns_pad     # support re-embedded per tile (cheap)
    flops = (2 * rows * in_dim * hidden + 2 * rows * hidden * emb
             + 2 * n_tiles * nw_pad * ns_pad * emb
             + 2 * nq_pad * emb * nw_pad)
    bytes_accessed = (xs.size * 2 + xq.size * 2 + w1_bf.size * 2
                      + w2_bf.size * 2 + b1_f.size * 4 + b2_f.size * 4
                      + proto_w.size * 4 + nq_pad * nw_pad * 4)
    transcendentals = nq_pad * nw_pad + n_tiles * (nq_pad + nw_pad)

    kernel = functools.partial(_protonet_kernel, dist=dist)
    out = pl.pallas_call(
        kernel,
        out_shape=jax.ShapeDtypeStruct((nq_pad, nw_pad), jnp.float32),
        grid=(n_tiles,),
        in_specs=[
            _const_spec(xs.shape),        # support rows  (resident)
            _const_spec(proto_w.shape),   # averaging mat (resident)
            _const_spec(w1_bf.shape),     # weights       (resident)
            _const_spec(b1_f.shape),
            _const_spec(w2_bf.shape),
            _const_spec(b2_f.shape),
            pl.BlockSpec((query_tile, in_dim), lambda i: (i, 0)),   # query tiles
        ],
        out_specs=pl.BlockSpec((query_tile, nw_pad), lambda i: (i, 0)),
        compiler_params=pltpu.CompilerParams(
            dimension_semantics=("parallel",),
            vmem_limit_bytes=48 * 1024 * 1024,
        ),
        cost_estimate=pl.CostEstimate(flops=flops,
                                      transcendentals=transcendentals,
                                      bytes_accessed=bytes_accessed),
    )(xs, proto_w, w1_bf, b1_f, w2_bf, b2_f, xq)

    return out[:nq, :n_way]


# ---------------------------------------------------------------------------
# Pure-JAX reference (mirrors the kernel's bf16 matmul casts) for validation
# ---------------------------------------------------------------------------
def _reference_forward(support_images, support_labels, query_images, params,
                       n_way, dist):
    w1, b1, w2, b2 = params

    def backbone(x):
        xb = x.reshape(x.shape[0], -1).astype(jnp.bfloat16)
        h = jnp.dot(xb, w1.astype(jnp.bfloat16),
                    preferred_element_type=jnp.float32)
        h = jnp.maximum(h + b1.astype(jnp.float32), 0.0)
        z = jnp.dot(h.astype(jnp.bfloat16), w2.astype(jnp.bfloat16),
                    preferred_element_type=jnp.float32)
        return z + b2.astype(jnp.float32)

    z_s = backbone(support_images)
    z_q = backbone(query_images)
    onehot = jax.nn.one_hot(support_labels, n_way, dtype=jnp.float32).T
    proto_w = onehot / jnp.maximum(onehot.sum(1, keepdims=True), 1.0)
    z_p = proto_w @ z_s
    if dist == "CosineSimilarity":
        eps = 1e-6
        qn = jnp.maximum(jnp.sqrt(jnp.sum(z_q * z_q, axis=1, keepdims=True)), eps)
        pn = jnp.maximum(jnp.sqrt(jnp.sum(z_p * z_p, axis=1, keepdims=True)), eps)
        return (z_q @ z_p.T) / (qn * pn.T)
    d = jnp.sqrt(jnp.maximum(
        jnp.sum((z_q[:, None, :] - z_p[None, :, :]) ** 2, axis=-1), 0.0))
    return -d


# ---------------------------------------------------------------------------
# Deterministic parameter init + demo
# ---------------------------------------------------------------------------
def init_params(key, in_dim, hidden, emb):
    k1, k2, k3, k4 = jax.random.split(key, 4)
    w1 = jax.random.normal(k1, (in_dim, hidden), jnp.float32) * 0.02
    b1 = jax.random.normal(k2, (1, hidden), jnp.float32) * 0.01
    w2 = jax.random.normal(k3, (hidden, emb), jnp.float32) * 0.02
    b2 = jax.random.normal(k4, (1, emb), jnp.float32) * 0.01
    return (w1, b1, w2, b2)


if __name__ == "__main__":
    key = jax.random.PRNGKey(0)
    k_img_s, k_img_q, k_params = jax.random.split(key, 3)

    # Small shapes: images (N, C=4, H=16, W=16); 2-way / 4-shot support, 6 queries.
    C, H, W = 4, 16, 16
    n_way, n_shot, n_query = 2, 4, 6
    n_support = n_way * n_shot
    in_dim = C * H * W
    # 256-multiple backbone dims (fills the 256-wide MXU on v6e/v7x).
    hidden, emb = 256, 256

    support_images = jax.random.normal(k_img_s, (n_support, C, H, W), jnp.float32)
    query_images = jax.random.normal(k_img_q, (n_query, C, H, W), jnp.float32)
    support_labels = jnp.repeat(jnp.arange(n_way, dtype=jnp.int32), n_shot)

    params = init_params(k_params, in_dim, hidden, emb)

    # Cosine branch (module default).
    scores = protonet_forward(support_images, support_labels, query_images,
                              params, n_way=n_way, dist="CosineSimilarity")
    scores = jax.block_until_ready(scores)
    assert scores.shape == (n_query, n_way)
    assert bool(jnp.all(jnp.isfinite(scores)))
    ref_c = _reference_forward(support_images, support_labels, query_images,
                               params, n_way, "CosineSimilarity")
    assert bool(jnp.allclose(scores, ref_c, rtol=5e-2, atol=5e-2))

    # Euclidean branch (-cdist).
    scores_e = protonet_forward(support_images, support_labels, query_images,
                                params, n_way=n_way, dist="Euclidean")
    scores_e = jax.block_until_ready(scores_e)
    assert scores_e.shape == (n_query, n_way)
    assert bool(jnp.all(jnp.isfinite(scores_e)))
    assert bool(jnp.all(scores_e <= 0.0))
    ref_e = _reference_forward(support_images, support_labels, query_images,
                               params, n_way, "Euclidean")
    assert bool(jnp.allclose(scores_e, ref_e, rtol=5e-2, atol=5e-2))

    print("KERNEL_OK")
</pallas_src>

<mosaic_0001>
module attributes {stable_mosaic.version = 11 : i64} {
  func.func @_protonet_kernel(%arg0: i32, %arg1: memref<8x1024xbf16, #tpu.memory_space<vmem>>, %arg2: memref<128x8xf32, #tpu.memory_space<vmem>>, %arg3: memref<1024x256xbf16, #tpu.memory_space<vmem>>, %arg4: memref<1x256xf32, #tpu.memory_space<vmem>>, %arg5: memref<256x256xbf16, #tpu.memory_space<vmem>>, %arg6: memref<1x256xf32, #tpu.memory_space<vmem>>, %arg7: memref<128x1024xbf16, #tpu.memory_space<vmem>>, %arg8: memref<128x128xf32, #tpu.memory_space<vmem>>) attributes {dimension_semantics = [#tpu.dimension_semantics<parallel>], iteration_bounds = array<i64: 1>, scalar_prefetch = 0 : i64, scratch_operands = 0 : i64, tpu.core_type = #tpu.core_type<tc>, window_params = [{pipeline_mode = #tpu.pipeline_mode<synchronous>, transform_indices = @transform_0, window_bounds = array<i64: 8, 1024>}, {pipeline_mode = #tpu.pipeline_mode<synchronous>, transform_indices = @transform_1, window_bounds = array<i64: 128, 8>}, {pipeline_mode = #tpu.pipeline_mode<synchronous>, transform_indices = @transform_2, window_bounds = array<i64: 1024, 256>}, {pipeline_mode = #tpu.pipeline_mode<synchronous>, transform_indices = @transform_3, window_bounds = array<i64: 1, 256>}, {pipeline_mode = #tpu.pipeline_mode<synchronous>, transform_indices = @transform_4, window_bounds = array<i64: 256, 256>}, {pipeline_mode = #tpu.pipeline_mode<synchronous>, transform_indices = @transform_5, window_bounds = array<i64: 1, 256>}, {transform_indices = @transform_6, window_bounds = array<i64: 128, 1024>}, {transform_indices = @transform_7, window_bounds = array<i64: 128, 128>}]} {
    %c0 = arith.constant 0 : index
    %c0_0 = arith.constant 0 : index
    %0 = vector.load %arg3[%c0, %c0_0] : memref<1024x256xbf16, #tpu.memory_space<vmem>>, vector<1024x256xbf16>
    %c0_1 = arith.constant 0 : index
    %c0_2 = arith.constant 0 : index
    %1 = vector.load %arg4[%c0_1, %c0_2] : memref<1x256xf32, #tpu.memory_space<vmem>>, vector<1x256xf32>
    %c0_3 = arith.constant 0 : index
    %c0_4 = arith.constant 0 : index
    %2 = vector.load %arg5[%c0_3, %c0_4] : memref<256x256xbf16, #tpu.memory_space<vmem>>, vector<256x256xbf16>
    %c0_5 = arith.constant 0 : index
    %c0_6 = arith.constant 0 : index
    %3 = vector.load %arg6[%c0_5, %c0_6] : memref<1x256xf32, #tpu.memory_space<vmem>>, vector<1x256xf32>
    %c0_7 = arith.constant 0 : index
    %c0_8 = arith.constant 0 : index
    %4 = vector.load %arg1[%c0_7, %c0_8] : memref<8x1024xbf16, #tpu.memory_space<vmem>>, vector<8x1024xbf16>
    %cst = arith.constant dense<0.000000e+00> : vector<8x256xf32>
    %5 = tpu.matmul %4, %0, %cst {dimension_numbers = #tpu.dot_dimension_numbers<[1], [0], [0], [1], [0, 0, 1, 1], [], []>} : vector<8x1024xbf16>, vector<1024x256xbf16>, vector<8x256xf32> -> vector<8x256xf32>
    %6 = vector.broadcast %1 : vector<1x256xf32> to vector<8x256xf32>
    %7 = arith.addf %5, %6 : vector<8x256xf32>
    %cst_9 = arith.constant 0.000000e+00 : f32
    %8 = vector.broadcast %cst_9 : f32 to vector<8x256xf32>
    %9 = arith.maximumf %7, %8 : vector<8x256xf32>
    %10 = arith.truncf %9 : vector<8x256xf32> to vector<8x256xbf16>
    %cst_10 = arith.constant dense<0.000000e+00> : vector<8x256xf32>
    %11 = tpu.matmul %10, %2, %cst_10 {dimension_numbers = #tpu.dot_dimension_numbers<[1], [0], [0], [1], [0, 0, 1, 1], [], []>} : vector<8x256xbf16>, vector<256x256xbf16>, vector<8x256xf32> -> vector<8x256xf32>
    %12 = vector.broadcast %3 : vector<1x256xf32> to vector<8x256xf32>
    %13 = arith.addf %11, %12 : vector<8x256xf32>
    %c0_11 = arith.constant 0 : index
    %c0_12 = arith.constant 0 : index
    %14 = vector.load %arg7[%c0_11, %c0_12] : memref<128x1024xbf16, #tpu.memory_space<vmem>>, vector<128x1024xbf16>
    %cst_13 = arith.constant dense<0.000000e+00> : vector<128x256xf32>
    %15 = tpu.matmul %14, %0, %cst_13 {dimension_numbers = #tpu.dot_dimension_numbers<[1], [0], [0], [1], [0, 0, 1, 1], [], []>} : vector<128x1024xbf16>, vector<1024x256xbf16>, vector<128x256xf32> -> vector<128x256xf32>
    %16 = vector.broadcast %1 : vector<1x256xf32> to vector<128x256xf32>
    %17 = arith.addf %15, %16 : vector<128x256xf32>
    %cst_14 = arith.constant 0.000000e+00 : f32
    %18 = vector.broadcast %cst_14 : f32 to vector<128x256xf32>
    %19 = arith.maximumf %17, %18 : vector<128x256xf32>
    %20 = arith.truncf %19 : vector<128x256xf32> to vector<128x256xbf16>
    %cst_15 = arith.constant dense<0.000000e+00> : vector<128x256xf32>
    %21 = tpu.matmul %20, %2, %cst_15 {dimension_numbers = #tpu.dot_dimension_numbers<[1], [0], [0], [1], [0, 0, 1, 1], [], []>} : vector<128x256xbf16>, vector<256x256xbf16>, vector<128x256xf32> -> vector<128x256xf32>
    %22 = vector.broadcast %3 : vector<1x256xf32> to vector<128x256xf32>
    %23 = arith.addf %21, %22 : vector<128x256xf32>
    %c0_16 = arith.constant 0 : index
    %c0_17 = arith.constant 0 : index
    %24 = vector.load %arg2[%c0_16, %c0_17] : memref<128x8xf32, #tpu.memory_space<vmem>>, vector<128x8xf32>
    %cst_18 = arith.constant dense<0.000000e+00> : vector<128x256xf32>
    %25 = tpu.matmul %24, %13, %cst_18 {dimension_numbers = #tpu.dot_dimension_numbers<[1], [0], [0], [1], [0, 0, 1, 1], [], []>} : vector<128x8xf32>, vector<8x256xf32>, vector<128x256xf32> -> vector<128x256xf32>
    %26 = arith.mulf %23, %23 : vector<128x256xf32>
    %cst_19 = arith.constant dense<0.000000e+00> : vector<128xf32>
    %27 = vector.multi_reduction <add>, %26, %cst_19 [1] : vector<128x256xf32> to vector<128xf32>
    %28 = vector.shape_cast %27 : vector<128xf32> to vector<128x1xf32>
    %29 = arith.mulf %25, %25 : vector<128x256xf32>
    %cst_20 = arith.constant dense<0.000000e+00> : vector<128xf32>
    %30 = vector.multi_reduction <add>, %29, %cst_20 [1] : vector<128x256xf32> to vector<128xf32>
    %31 = vector.shape_cast %30 : vector<128xf32> to vector<128x1xf32>
    %cst_21 = arith.constant 9.99999996E-13 : f32
    %32 = vector.broadcast %cst_21 : f32 to vector<128x1xf32>
    %33 = arith.maximumf %28, %32 : vector<128x1xf32>
    %34 = math.rsqrt %33 : vector<128x1xf32>
    %cst_22 = arith.constant 9.99999996E-13 : f32
    %35 = vector.broadcast %cst_22 : f32 to vector<128x1xf32>
    %36 = arith.maximumf %31, %35 : vector<128x1xf32>
    %37 = math.rsqrt %36 : vector<128x1xf32>
    %38 = vector.broadcast %37 : vector<128x1xf32> to vector<128x256xf32>
    %39 = arith.mulf %25, %38 : vector<128x256xf32>
    %cst_23 = arith.constant dense<0.000000e+00> : vector<128x128xf32>
    %40 = tpu.matmul %23, %39, %cst_23 {dimension_numbers = #tpu.dot_dimension_numbers<[1], [1], [0], [0], [0, 0, 1, 0], [], []>} : vector<128x256xf32>, vector<128x256xf32>, vector<128x128xf32> -> vector<128x128xf32>
    %41 = vector.broadcast %34 : vector<128x1xf32> to vector<128x128xf32>
    %42 = arith.mulf %40, %41 : vector<128x128xf32>
    %c0_24 = arith.constant 0 : index
    %c0_25 = arith.constant 0 : index
    %43 = vector.load %arg8[%c0_24, %c0_25] : memref<128x128xf32, #tpu.memory_space<vmem>>, vector<128x128xf32>
    tpu.vector_store %arg8[%c0_24, %c0_25], %42 {strides = array<i32>} : memref<128x128xf32, #tpu.memory_space<vmem>>, vector<128x128xf32>,
    return
  }
  func.func @transform_0(%arg0: i32) -> (i32, i32) {
    %c0_i32 = arith.constant 0 : i32
    %c0_i32_0 = arith.constant 0 : i32
    %c0_i32_1 = arith.constant 0 : i32
    return %c0_i32, %c0_i32_0 : i32, i32
  }
  func.func @transform_1(%arg0: i32) -> (i32, i32) {
    %c0_i32 = arith.constant 0 : i32
    %c0_i32_0 = arith.constant 0 : i32
    %c0_i32_1 = arith.constant 0 : i32
    return %c0_i32, %c0_i32_0 : i32, i32
  }
  func.func @transform_2(%arg0: i32) -> (i32, i32) {
    %c0_i32 = arith.constant 0 : i32
    %c0_i32_0 = arith.constant 0 : i32
    %c0_i32_1 = arith.constant 0 : i32
    return %c0_i32, %c0_i32_0 : i32, i32
  }
  func.func @transform_3(%arg0: i32) -> (i32, i32) {
    %c0_i32 = arith.constant 0 : i32
    %c0_i32_0 = arith.constant 0 : i32
    %c0_i32_1 = arith.constant 0 : i32
    return %c0_i32, %c0_i32_0 : i32, i32
  }
  func.func @transform_4(%arg0: i32) -> (i32, i32) {
    %c0_i32 = arith.constant 0 : i32
    %c0_i32_0 = arith.constant 0 : i32
    %c0_i32_1 = arith.constant 0 : i32
    return %c0_i32, %c0_i32_0 : i32, i32
  }
  func.func @transform_5(%arg0: i32) -> (i32, i32) {
    %c0_i32 = arith.constant 0 : i32
    %c0_i32_0 = arith.constant 0 : i32
    %c0_i32_1 = arith.constant 0 : i32
    return %c0_i32, %c0_i32_0 : i32, i32
  }
  func.func @transform_6(%arg0: i32) -> (i32, i32) {
    %c0_i32 = arith.constant 0 : i32
    %c0_i32_0 = arith.constant 0 : i32
    return %arg0, %c0_i32 : i32, i32
  }
  func.func @transform_7(%arg0: i32) -> (i32, i32) {
    %c0_i32 = arith.constant 0 : i32
    %c0_i32_0 = arith.constant 0 : i32
    return %arg0, %c0_i32 : i32, i32
  }
}

</mosaic_0001>

<bundles_post_ra>
// kernel: protonet_forward.1
= control target key start
LH: loop header
LB: loop body
LE: loop exit
PB: predicated region body
PF: predicated region fallthrough
CT: control target
= control target key end

     0   :  { %vm2264_vm0 = vcmask 64512   ;;  %s5639_s2 = inlined_call_operand.vmem [shape: bf16[1024,256], index: 2, kind: input, shape index: {}]   ;;  %s5640_s0 = inlined_call_operand.vmem [shape: bf16[8,1024], index: 0, kind: input, shape index: {}]   ;;  %s5641_s4 = inlined_call_operand.vmem [shape: bf16[256,256], index: 4, kind: input, shape index: {}]   ;;  %s5642_s3 = inlined_call_operand.vmem [shape: f32[1,256], index: 3, kind: input, shape index: {}]   ;;  %s5643_s6 = inlined_call_operand.vmem [shape: bf16[128,1024], index: 6, kind: input, shape index: {}]   ;;  %s5644_s5 = inlined_call_operand.vmem [shape: f32[1,256], index: 5, kind: input, shape index: {}]   ;;  %s5645_s1 = inlined_call_operand.vmem [shape: f32[128,8], index: 1, kind: input, shape index: {}]   ;;  %s5646_s7 = inlined_call_operand.vmem [shape: f32[128,128], index: 7, kind: output, shape index: {}]  }
   0x1   :  { %v3334_v0 = vld [vmem:[%s5639_s2 + $0x4] ss:$8 sps:$4 sm:$0xff]   ;;  %v3336_v1 = vld [vmem:[%s5639_s2] ss:$8 sps:$4 sm:$0xff]   ;;  %v3337_v2 = vld [vmem:[%s5639_s2 + $0x14] ss:$8 sps:$4 sm:$0xff]  }
   0x2   :  { %871 = vmatprep.subr.bf16.mxu0 %v3334_v0  ;;  %v3339_v3 = vld [vmem:[%s5639_s2 + $0x10] ss:$8 sps:$4 sm:$0xff]   ;;  %v3340_v4 = vld [vmem:[%s5639_s2 + $0x24] ss:$8 sps:$4 sm:$0xff]   ;;  %v3342_v5 = vld [vmem:[%s5639_s2 + $0x20] ss:$8 sps:$4 sm:$0xff]  }
   0x3   :  { %872 = vmatpush1.bf16.msra.mxu0 %v3336_v1  ;;  %v3343_v6 = vld [vmem:[%s5639_s2 + $0x34] ss:$8 sps:$4 sm:$0xff]   ;;  %v3345_v7 = vld [vmem:[%s5639_s2 + $0x30] ss:$8 sps:$4 sm:$0xff]   ;;  %v3346_v8 = vld [vmem:[%s5639_s2 + $0x44] ss:$8 sps:$4 sm:$0xff]  }
   0x4   :  { %873 = vmatprep.subr.bf16.mxu0 %v3337_v2  ;;  %v3348_v9 = vld [vmem:[%s5639_s2 + $0x40] ss:$8 sps:$4 sm:$0xff]   ;;  %v3349_v10 = vld [vmem:[%s5639_s2 + $0x54] ss:$8 sps:$4 sm:$0xff]   ;;  %v3351_v11 = vld [vmem:[%s5639_s2 + $0x50] ss:$8 sps:$4 sm:$0xff]  }
   0x5   :  { %v3352_v12 = vld [vmem:[%s5639_s2 + $0x64] ss:$8 sps:$4 sm:$0xff]   ;;  %v3745_v15 = vld [vmem:[%s5639_s2 + $0x60] ss:$8 sps:$4 sm:$0xff]   ;;  %v3750_v16 = vld [vmem:[%s5639_s2 + $0x74] ss:$8 sps:$4 sm:$0xff]  }
   0x6   :  { %v188_v13 = vld [vmem:[%s5640_s0] sm:$0xff]  ;;  %v3756_v17 = vld [vmem:[%s5639_s2 + $0x70] ss:$8 sps:$4 sm:$0xff]   ;;  %v3774_v20 = vld [vmem:[%s5639_s2 + $0x94] ss:$8 sps:$4 sm:$0xff]  }
   0x7   :  { %874 = vmatpush1.bf16.msra.mxu0 %v3339_v3  ;;  %v2912_v14 = vcombine.high %v188_v13, %v188_v13  ;;  %v3762_v18 = vld [vmem:[%s5639_s2 + $0x84] ss:$8 sps:$4 sm:$0xff]   ;;  %v3768_v19 = vld [vmem:[%s5639_s2 + $0x80] ss:$8 sps:$4 sm:$0xff]   ;;  %v3780_v21 = vld [vmem:[%s5639_s2 + $0x90] ss:$8 sps:$4 sm:$0xff]   ;;  %v2911_v36 = vcombine.low %v188_v13, %v188_v13 }
   0x8   :  { %875 = vmatprep.subr.bf16.mxu0 %v3340_v4  ;;  %v3786_v22 = vld [vmem:[%s5639_s2 + $0xa4] ss:$8 sps:$4 sm:$0xff]   ;;  %v3792_v23 = vld [vmem:[%s5639_s2 + $0xa0] ss:$8 sps:$4 sm:$0xff]   ;;  %v3798_v24 = vld [vmem:[%s5639_s2 + $0xb4] ss:$8 sps:$4 sm:$0xff]  }
   0x9   :  { %903 = vmatprep.mubr.bf16.mxu0 %v2912_v14  ;;  %v3804_v25 = vld [vmem:[%s5639_s2 + $0xb0] ss:$8 sps:$4 sm:$0xff]   ;;  %v3810_v26 = vld [vmem:[%s5639_s2 + $0xc4] ss:$8 sps:$4 sm:$0xff]   ;;  %v3816_v27 = vld [vmem:[%s5639_s2 + $0xc0] ss:$8 sps:$4 sm:$0xff]  }
   0xa   :  { %v3822_v28 = vld [vmem:[%s5639_s2 + $0xd4] ss:$8 sps:$4 sm:$0xff]   ;;  %v3828_v29 = vld [vmem:[%s5639_s2 + $0xd0] ss:$8 sps:$4 sm:$0xff]   ;;  %v3834_v30 = vld [vmem:[%s5639_s2 + $0xe4] ss:$8 sps:$4 sm:$0xff]  }
   0xb   :  { %876 = vmatpush1.bf16.msra.mxu0 %v3342_v5  ;;  %v3840_v31 = vld [vmem:[%s5639_s2 + $0xe0] ss:$8 sps:$4 sm:$0xff]   ;;  %v3846_v32 = vld [vmem:[%s5639_s2 + $0xf4] ss:$8 sps:$4 sm:$0xff]   ;;  %v3852_v33 = vld [vmem:[%s5639_s2 + $0xf0] ss:$8 sps:$4 sm:$0xff]  }
   0xc   :  { %877 = vmatprep.subr.bf16.mxu0 %v3343_v6  ;;  %v3858_v34 = vld [vmem:[%s5639_s2 + $0x104] ss:$8 sps:$4 sm:$0xff]   ;;  %v3869_v37 = vld [vmem:[%s5639_s2 + $0x100] ss:$8 sps:$4 sm:$0xff]   ;;  %v3877_v39 = vld [vmem:[%s5639_s2 + $0x114] ss:$8 sps:$4 sm:$0xff]  }
   0xd   :  { %v3863_v35 = vld [vmem:[%s5640_s0 + $0x8] sm:$0xff]  ;;  %v3883_v40 = vld [vmem:[%s5639_s2 + $0x110] ss:$8 sps:$4 sm:$0xff]   ;;  %v3900_v43 = vld [vmem:[%s5639_s2 + $0x134] ss:$8 sps:$4 sm:$0xff]  }
   0xe   :  { %v2914_v38 = vcombine.high %v3863_v35, %v3863_v35  ;;  %v3888_v41 = vld [vmem:[%s5639_s2 + $0x124] ss:$8 sps:$4 sm:$0xff]   ;;  %v3895_v42 = vld [vmem:[%s5639_s2 + $0x120] ss:$8 sps:$4 sm:$0xff]   ;;  %v3907_v44 = vld [vmem:[%s5639_s2 + $0x130] ss:$8 sps:$4 sm:$0xff]  }
   0xf   :  { %878 = vmatpush1.bf16.msra.mxu0 %v3345_v7  ;;  %v3912_v45 = vld [vmem:[%s5639_s2 + $0x144] ss:$8 sps:$4 sm:$0xff]   ;;  %v3919_v46 = vld [vmem:[%s5639_s2 + $0x140] ss:$8 sps:$4 sm:$0xff]   ;;  %v3925_v47 = vld [vmem:[%s5639_s2 + $0x154] ss:$8 sps:$4 sm:$0xff]   ;;  %v2913_v7 = vcombine.low %v3863_v35, %v3863_v35 }
  0x10   :  { %879 = vmatprep.subr.bf16.mxu0 %v3346_v8  ;;  %5746 = vst [vmem:[#allocation2_spill] sm:$0xff] %v3919_v46  ;;  %5747 = vst [vmem:[#allocation3_spill] sm:$0xff] %v3925_v47  ;;  %v3931_v48 = vld [vmem:[%s5639_s2 + $0x150] ss:$8 sps:$4 sm:$0xff]   ;;  %v3937_v49 = vld [vmem:[%s5639_s2 + $0x164] ss:$8 sps:$4 sm:$0xff]  }
  0x11   :  { %5748 = vst [vmem:[#allocation4_spill] sm:$0xff] %v3931_v48  ;;  %5749 = vst [vmem:[#allocation5_spill] sm:$0xff] %v3937_v49  ;;  %v3943_v50 = vld [vmem:[%s5639_s2 + $0x160] ss:$8 sps:$4 sm:$0xff]   ;;  %v3949_v51 = vld [vmem:[%s5639_s2 + $0x174] ss:$8 sps:$4 sm:$0xff]  }
  0x12   :  { %5750 = vst [vmem:[#allocation6_spill] sm:$0xff] %v3943_v50  ;;  %5751 = vst [vmem:[#allocation7_spill] sm:$0xff] %v3949_v51  ;;  %v3955_v52 = vld [vmem:[%s5639_s2 + $0x170] ss:$8 sps:$4 sm:$0xff]   ;;  %v3961_v53 = vld [vmem:[%s5639_s2 + $0x184] ss:$8 sps:$4 sm:$0xff]  }
  0x13   :  { %880 = vmatpush1.bf16.msra.mxu0 %v3348_v9  ;;  %5752 = vst [vmem:[#allocation8_spill] sm:$0xff] %v3955_v52  ;;  %5753 = vst [vmem:[#allocation9_spill] sm:$0xff] %v3961_v53  ;;  %v3967_v54 = vld [vmem:[%s5639_s2 + $0x180] ss:$8 sps:$4 sm:$0xff]   ;;  %v3973_v55 = vld [vmem:[%s5639_s2 + $0x194] ss:$8 sps:$4 sm:$0xff]  }
  0x14   :  { %881 = vmatprep.subr.bf16.mxu0 %v3349_v10  ;;  %5754 = vst [vmem:[#allocation10_spill] sm:$0xff] %v3967_v54  ;;  %5755 = vst [vmem:[#allocation11_spill] sm:$0xff] %v3973_v55  ;;  %v3979_v56 = vld [vmem:[%s5639_s2 + $0x190] ss:$8 sps:$4 sm:$0xff]   ;;  %v3985_v57 = vld [vmem:[%s5639_s2 + $0x1a4] ss:$8 sps:$4 sm:$0xff]  }
  0x15   :  { %5756 = vst [vmem:[#allocation12_spill] sm:$0xff] %v3979_v56  ;;  %5757 = vst [vmem:[#allocation13_spill] sm:$0xff] %v3985_v57  ;;  %v3991_v58 = vld [vmem:[%s5639_s2 + $0x1a0] ss:$8 sps:$4 sm:$0xff]   ;;  %v3997_v59 = vld [vmem:[%s5639_s2 + $0x1b4] ss:$8 sps:$4 sm:$0xff]  }
  0x16   :  { %5758 = vst [vmem:[#allocation14_spill] sm:$0xff] %v3991_v58  ;;  %5759 = vst [vmem:[#allocation15_spill] sm:$0xff] %v3997_v59  ;;  %v4003_v60 = vld [vmem:[%s5639_s2 + $0x1b0] ss:$8 sps:$4 sm:$0xff]   ;;  %v4009_v61 = vld [vmem:[%s5639_s2 + $0x1c4] ss:$8 sps:$4 sm:$0xff]  }
  0x17   :  { %882 = vmatpush1.bf16.msra.mxu0 %v3351_v11  ;;  %5760 = vst [vmem:[#allocation16_spill] sm:$0xff] %v4003_v60  ;;  %5761 = vst [vmem:[#allocation17_spill] sm:$0xff] %v4009_v61  ;;  %v4015_v62 = vld [vmem:[%s5639_s2 + $0x1c0] ss:$8 sps:$4 sm:$0xff]   ;;  %v4021_v63 = vld [vmem:[%s5639_s2 + $0x1d4] ss:$8 sps:$4 sm:$0xff]  }
  0x18   :  { %883 = vmatprep.subr.bf16.mxu0 %v3352_v12  ;;  %5762 = vst [vmem:[#allocation18_spill] sm:$0xff] %v4015_v62  ;;  %5763 = vst [vmem:[#allocation19_spill] sm:$0xff] %v4021_v63  ;;  %v4027_v0 = vld [vmem:[%s5639_s2 + $0x1d0] ss:$8 sps:$4 sm:$0xff]   ;;  %v4033_v1 = vld [vmem:[%s5639_s2 + $0x1e4] ss:$8 sps:$4 sm:$0xff]  }
  0x19   :  { %5764 = vst [vmem:[#allocation20_spill] sm:$0xff] %v4027_v0  ;;  %5765 = vst [vmem:[#allocation21_spill] sm:$0xff] %v4033_v1  ;;  %v4039_v2 = vld [vmem:[%s5639_s2 + $0x1e0] ss:$8 sps:$4 sm:$0xff]   ;;  %v4045_v3 = vld [vmem:[%s5639_s2 + $0x1f4] ss:$8 sps:$4 sm:$0xff]  }
  0x1a   :  { %5766 = vst [vmem:[#allocation22_spill] sm:$0xff] %v4039_v2  ;;  %5767 = vst [vmem:[#allocation23_spill] sm:$0xff] %v4045_v3  ;;  %v4051_v4 = vld [vmem:[%s5639_s2 + $0x1f0] ss:$8 sps:$4 sm:$0xff]   ;;  %v4057_v5 = vld [vmem:[%s5639_s2 + $0x204] ss:$8 sps:$4 sm:$0xff]  }
  0x1b   :  { %884 = vmatpush1.bf16.msra.mxu0 %v3745_v15  ;;  %5768 = vst [vmem:[#allocation24_spill] sm:$0xff] %v4051_v4  ;;  %5769 = vst [vmem:[#allocation25_spill] sm:$0xff] %v4057_v5  ;;  %v4062_v6 = vld [vmem:[%s5640_s0 + $0x10] sm:$0xff]  ;;  %v4070_v8 = vld [vmem:[%s5639_s2 + $0x200] ss:$8 sps:$4 sm:$0xff]  }
  0x1c   :  { %885 = vmatprep.subr.bf16.mxu0 %v3750_v16  ;;  %5770 = vst [vmem:[#allocation26_spill] sm:$0xff] %v4070_v8  ;;  %v2916_v9 = vcombine.high %v4062_v6, %v4062_v6  ;;  %v4078_v10 = vld [vmem:[%s5639_s2 + $0x214] ss:$8 sps:$4 sm:$0xff]   ;;  %v4083_v11 = vld [vmem:[%s5639_s2 + $0x210] ss:$8 sps:$4 sm:$0xff]  }
  0x1d   :  { %5771 = vst [vmem:[#allocation27_spill] sm:$0xff] %v4078_v10  ;;  %5772 = vst [vmem:[#allocation28_spill] sm:$0xff] %v4083_v11  ;;  %v4088_v12 = vld [vmem:[%s5639_s2 + $0x224] ss:$8 sps:$4 sm:$0xff]   ;;  %v4100_v14 = vld [vmem:[%s5641_s4] ss:$8 sps:$4 sm:$0xff]  }
  0x1e   :  { %5773 = vst [vmem:[#allocation29_spill] sm:$0xff] %v4088_v12  ;;  %v4094_v13 = vld [vmem:[%s5641_s4 + $0x4] ss:$8 sps:$4 sm:$0xff]   ;;  %v4106_v35 = vld [vmem:[%s5641_s4 + $0x14] ss:$8 sps:$4 sm:$0xff]  }
  0x1f   :  { %886 = vmatpush1.bf16.msra.mxu0 %v3756_v17  ;;  %1210 = vmatprep.subr.bf16.mxu1 %v4094_v13 }
  0x20   :  { %887 = vmatprep.subr.bf16.mxu0 %v3762_v18  ;;  %1211 = vmatpush1.bf16.msra.mxu1 %v4100_v14 }
  0x21   :  { %1212 = vmatprep.subr.bf16.mxu1 %v4106_v35 }
  0x23   :  { %888 = vmatpush1.bf16.msra.mxu0 %v3768_v19 }
  0x24   :  { %889 = vmatprep.subr.bf16.mxu0 %v3774_v20 }
  0x27   :  { %890 = vmatpush1.bf16.msra.mxu0 %v3780_v21 }
  0x28   :  { %891 = vmatprep.subr.bf16.mxu0 %v3786_v22 }
  0x2b   :  { %892 = vmatpush1.bf16.msra.mxu0 %v3792_v23 }
  0x2c   :  { %893 = vmatprep.subr.bf16.mxu0 %v3798_v24 }
  0x2f   :  { %894 = vmatpush1.bf16.msra.mxu0 %v3804_v25 }
  0x30   :  { %895 = vmatprep.subr.bf16.mxu0 %v3810_v26 }
  0x33   :  { %896 = vmatpush1.bf16.msra.mxu0 %v3816_v27 }
  0x34   :  { %897 = vmatprep.subr.bf16.mxu0 %v3822_v28 }
  0x37   :  { %898 = vmatpush1.bf16.msra.mxu0 %v3828_v29 }
  0x38   :  { %899 = vmatprep.subr.bf16.mxu0 %v3834_v30 }
  0x3b   :  { %900 = vmatpush1.bf16.msra.mxu0 %v3840_v31 }
  0x3c   :  { %901 = vmatprep.subr.bf16.mxu0 %v3846_v32 }
  0x3f   :  { %902 = vmatpush1.bf16.msra.mxu0 %v3852_v33 }
  0x40   :  { %912 = vmatprep.subr.bf16.mxu0 %v3858_v34 }
  0x42   :  { %904 = vmatmul.mubr.bf16.vlgmr.msra.gmra.mrb[0].mxu0 %v2911_v36  ;;  %v4111_v36 = vld [vmem:[%s5639_s2 + $0x220] ss:$8 sps:$4 sm:$0xff]  }
  0x43   :  { %913 = vmatpush1.bf16.msra.mxu0 %v3869_v37  ;;  %944 = vmatprep.mubr.bf16.mxu0 %v2914_v38  ;;  %5774 = vst [vmem:[#allocation30_spill] sm:$0xff] %v4111_v36  ;;  %v4117_v38 = vld [vmem:[%s5641_s4 + $0x10] ss:$8 sps:$4 sm:$0xff]  }
  0x44   :  { %914 = vmatprep.subr.bf16.mxu0 %v3877_v39  ;;  %1213 = vmatpush1.bf16.msra.mxu1 %v4117_v38 }
  0x47   :  { %915 = vmatpush1.bf16.msra.mxu0 %v3883_v40 }
  0x48   :  { %916 = vmatprep.subr.bf16.mxu0 %v3888_v41 }
  0x4b   :  { %917 = vmatpush1.bf16.msra.mxu0 %v3895_v42 }
  0x4c   :  { %918 = vmatprep.subr.bf16.mxu0 %v3900_v43 }
  0x4f   :  { %919 = vmatpush1.bf16.msra.mxu0 %v3907_v44 }
  0x50   :  { %920 = vmatprep.subr.bf16.mxu0 %v3912_v45 }
  0x53   :  { %921 = vmatpush1.bf16.msra.mxu0 %v3919_v46  ;;  %v4447_v46 = vld [vmem:[%s5639_s2 + $0x314] ss:$8 sps:$4 sm:$0xff]  }
  0x54   :  { %922 = vmatprep.subr.bf16.mxu0 %v3925_v47  ;;  %v4439_v47 = vld [vmem:[%s5639_s2 + $0x300] ss:$8 sps:$4 sm:$0xff]   ;;  %5801 = vst [vmem:[#allocation57_spill] sm:$0xff] %v4447_v46 }
  0x57   :  { %923 = vmatpush1.bf16.msra.mxu0 %v3931_v48  ;;  %v4431_v48 = vld [vmem:[%s5640_s0 + $0x18] sm:$0xff] }
  0x58   :  { %924 = vmatprep.subr.bf16.mxu0 %v3937_v49  ;;  %v4406_v49 = vld [vmem:[%s5639_s2 + $0x2e0] ss:$8 sps:$4 sm:$0xff]  }
  0x59   :  { %5798 = vst [vmem:[#allocation54_spill] sm:$0xff] %v4406_v49 }
  0x5b   :  { %925 = vmatpush1.bf16.msra.mxu0 %v3943_v50  ;;  %v4394_v50 = vld [vmem:[%s5639_s2 + $0x2e4] ss:$8 sps:$4 sm:$0xff]  }
  0x5c   :  { %926 = vmatprep.subr.bf16.mxu0 %v3949_v51  ;;  %v4382_v51 = vld [vmem:[%s5639_s2 + $0x2d0] ss:$8 sps:$4 sm:$0xff]   ;;  %5797 = vst [vmem:[#allocation53_spill] sm:$0xff] %v4394_v50 }
  0x5d   :  { %5796 = vst [vmem:[#allocation52_spill] sm:$0xff] %v4382_v51 }
  0x5f   :  { %927 = vmatpush1.bf16.msra.mxu0 %v3955_v52  ;;  %v4370_v52 = vld [vmem:[%s5639_s2 + $0x2d4] ss:$8 sps:$4 sm:$0xff]  }
  0x60   :  { %928 = vmatprep.subr.bf16.mxu0 %v3961_v53  ;;  %v4358_v53 = vld [vmem:[%s5639_s2 + $0x2c0] ss:$8 sps:$4 sm:$0xff]   ;;  %5795 = vst [vmem:[#allocation51_spill] sm:$0xff] %v4370_v52 }
  0x61   :  { %5794 = vst [vmem:[#allocation50_spill] sm:$0xff] %v4358_v53 }
  0x63   :  { %929 = vmatpush1.bf16.msra.mxu0 %v3967_v54  ;;  %v4346_v54 = vld [vmem:[%s5639_s2 + $0x2c4] ss:$8 sps:$4 sm:$0xff]  }
  0x64   :  { %930 = vmatprep.subr.bf16.mxu0 %v3973_v55  ;;  %v4334_v55 = vld [vmem:[%s5639_s2 + $0x2b0] ss:$8 sps:$4 sm:$0xff]   ;;  %5793 = vst [vmem:[#allocation49_spill] sm:$0xff] %v4346_v54 }
  0x65   :  { %5792 = vst [vmem:[#allocation48_spill] sm:$0xff] %v4334_v55 }
  0x67   :  { %931 = vmatpush1.bf16.msra.mxu0 %v3979_v56  ;;  %v4322_v56 = vld [vmem:[%s5639_s2 + $0x2b4] ss:$8 sps:$4 sm:$0xff]  }
  0x68   :  { %932 = vmatprep.subr.bf16.mxu0 %v3985_v57  ;;  %v4310_v57 = vld [vmem:[%s5639_s2 + $0x2a0] ss:$8 sps:$4 sm:$0xff]   ;;  %5791 = vst [vmem:[#allocation47_spill] sm:$0xff] %v4322_v56 }
  0x69   :  { %5790 = vst [vmem:[#allocation46_spill] sm:$0xff] %v4310_v57 }
  0x6b   :  { %933 = vmatpush1.bf16.msra.mxu0 %v3991_v58  ;;  %v4298_v58 = vld [vmem:[%s5639_s2 + $0x2a4] ss:$8 sps:$4 sm:$0xff]  }
  0x6c   :  { %934 = vmatprep.subr.bf16.mxu0 %v3997_v59  ;;  %v4286_v59 = vld [vmem:[%s5639_s2 + $0x290] ss:$8 sps:$4 sm:$0xff]   ;;  %5789 = vst [vmem:[#allocation45_spill] sm:$0xff] %v4298_v58 }
  0x6d   :  { %5788 = vst [vmem:[#allocation44_spill] sm:$0xff] %v4286_v59 }
  0x6f   :  { %935 = vmatpush1.bf16.msra.mxu0 %v4003_v60  ;;  %v4274_v60 = vld [vmem:[%s5639_s2 + $0x294] ss:$8 sps:$4 sm:$0xff]  }
  0x70   :  { %936 = vmatprep.subr.bf16.mxu0 %v4009_v61  ;;  %v4262_v61 = vld [vmem:[%s5639_s2 + $0x280] ss:$8 sps:$4 sm:$0xff]   ;;  %5787 = vst [vmem:[#allocation43_spill] sm:$0xff] %v4274_v60 }
  0x71   :  { %5786 = vst [vmem:[#allocation42_spill] sm:$0xff] %v4262_v61 }
  0x73   :  { %937 = vmatpush1.bf16.msra.mxu0 %v4015_v62  ;;  %v4250_v62 = vld [vmem:[%s5639_s2 + $0x284] ss:$8 sps:$4 sm:$0xff]  }
  0x74   :  { %938 = vmatprep.subr.bf16.mxu0 %v4021_v63  ;;  %v4238_v63 = vld [vmem:[%s5639_s2 + $0x270] ss:$8 sps:$4 sm:$0xff]   ;;  %5785 = vst [vmem:[#allocation41_spill] sm:$0xff] %v4250_v62 }
  0x75   :  { %5784 = vst [vmem:[#allocation40_spill] sm:$0xff] %v4238_v63 }
  0x77   :  { %939 = vmatpush1.bf16.msra.mxu0 %v4027_v0  ;;  %v4226_v0 = vld [vmem:[%s5639_s2 + $0x274] ss:$8 sps:$4 sm:$0xff]  }
  0x78   :  { %940 = vmatprep.subr.bf16.mxu0 %v4033_v1  ;;  %v4207_v1 = vld [vmem:[%s5641_s4 + $0x50] ss:$8 sps:$4 sm:$0xff]   ;;  %5783 = vst [vmem:[#allocation39_spill] sm:$0xff] %v4226_v0 }
  0x7b   :  { %941 = vmatpush1.bf16.msra.mxu0 %v4039_v2  ;;  %v4202_v2 = vld [vmem:[%s5639_s2 + $0x264] ss:$8 sps:$4 sm:$0xff]  }
  0x7c   :  { %942 = vmatprep.subr.bf16.mxu0 %v4045_v3  ;;  %v4183_v3 = vld [vmem:[%s5639_s2 + $0x250] ss:$8 sps:$4 sm:$0xff]   ;;  %5781 = vst [vmem:[#allocation37_spill] sm:$0xff] %v4202_v2 }
  0x7d   :  { %5780 = vst [vmem:[#allocation36_spill] sm:$0xff] %v4183_v3 }
  0x7f   :  { %943 = vmatpush1.bf16.msra.mxu0 %v4051_v4  ;;  %v4178_v4 = vld [vmem:[%s5639_s2 + $0x254] ss:$8 sps:$4 sm:$0xff]  }
  0x80   :  { %953 = vmatprep.subr.bf16.mxu0 %v4057_v5  ;;  %v4159_v5 = vld [vmem:[%s5639_s2 + $0x240] ss:$8 sps:$4 sm:$0xff]   ;;  %5779 = vst [vmem:[#allocation35_spill] sm:$0xff] %v4178_v4 }
  0x81   :  { %5778 = vst [vmem:[#allocation34_spill] sm:$0xff] %v4159_v5 }
  0x82   :  { %945 = vmatmul.mubr.bf16.vlgmr.msra.gmra.mrb[0].mxu0 %v2913_v7  ;;  %v4124_v7 = vld [vmem:[%s5641_s4 + $0x24] ss:$8 sps:$4 sm:$0xff]  }
  0x83   :  { %954 = vmatpush1.bf16.msra.mxu0 %v4070_v8  ;;  %985 = vmatprep.mubr.bf16.mxu0 %v2916_v9  ;;  %v4130_v9 = vld [vmem:[%s5639_s2 + $0x234] ss:$8 sps:$4 sm:$0xff]   ;;  %v4154_v8 = vld [vmem:[%s5639_s2 + $0x244] ss:$8 sps:$4 sm:$0xff]  }
  0x84   :  { %955 = vmatprep.subr.bf16.mxu0 %v4078_v10  ;;  %5775 = vst [vmem:[#allocation31_spill] sm:$0xff] %v4130_v9  ;;  %v4135_v10 = vld [vmem:[%s5639_s2 + $0x230] ss:$8 sps:$4 sm:$0xff]   ;;  %1214 = vmatprep.subr.bf16.mxu1 %v4124_v7  ;;  %5777 = vst [vmem:[#allocation33_spill] sm:$0xff] %v4154_v8 }
  0x85   :  { %5776 = vst [vmem:[#allocation32_spill] sm:$0xff] %v4135_v10 }
  0x87   :  { %956 = vmatpush1.bf16.msra.mxu0 %v4083_v11  ;;  %v4141_v11 = vld [vmem:[%s5641_s4 + $0x20] ss:$8 sps:$4 sm:$0xff]  }
  0x88   :  { %957 = vmatprep.subr.bf16.mxu0 %v4088_v12  ;;  %v4148_v12 = vld [vmem:[%s5641_s4 + $0x34] ss:$8 sps:$4 sm:$0xff]   ;;  %1215 = vmatpush1.bf16.msra.mxu1 %v4141_v11 }
  0x89   :  { %1216 = vmatprep.subr.bf16.mxu1 %v4148_v12 }
  0x8b   :  { %958 = vmatpush1.bf16.msra.mxu0 %v4111_v36  ;;  %v4165_v36 = vld [vmem:[%s5641_s4 + $0x30] ss:$8 sps:$4 sm:$0xff]  }
  0x8c   :  { %959 = vmatprep.subr.bf16.mxu0 %v4130_v9  ;;  %v4172_v9 = vld [vmem:[%s5641_s4 + $0x44] ss:$8 sps:$4 sm:$0xff]   ;;  %1217 = vmatpush1.bf16.msra.mxu1 %v4165_v36 }
  0x8d   :  { %1218 = vmatprep.subr.bf16.mxu1 %v4172_v9 }
  0x8f   :  { %960 = vmatpush1.bf16.msra.mxu0 %v4135_v10  ;;  %v4189_v10 = vld [vmem:[%s5641_s4 + $0x40] ss:$8 sps:$4 sm:$0xff]  }
  0x90   :  { %961 = vmatprep.subr.bf16.mxu0 %v4154_v8  ;;  %v4196_v8 = vld [vmem:[%s5641_s4 + $0x54] ss:$8 sps:$4 sm:$0xff]   ;;  %1219 = vmatpush1.bf16.msra.mxu1 %v4189_v10 }
  0x91   :  { %1220 = vmatprep.subr.bf16.mxu1 %v4196_v8 }
  0x93   :  { %962 = vmatpush1.bf16.msra.mxu0 %v4159_v5  ;;  %v4214_v5 = vld [vmem:[%s5639_s2 + $0x260] ss:$8 sps:$4 sm:$0xff]  }
  0x94   :  { %963 = vmatprep.subr.bf16.mxu0 %v4178_v4  ;;  %5782 = vst [vmem:[#allocation38_spill] sm:$0xff] %v4214_v5  ;;  %v4220_v4 = vld [vmem:[%s5641_s4 + $0x64] ss:$8 sps:$4 sm:$0xff]   ;;  %1221 = vmatpush1.bf16.msra.mxu1 %v4207_v1 }
  0x95   :  { %1222 = vmatprep.subr.bf16.mxu1 %v4220_v4 }
  0x97   :  { %964 = vmatpush1.bf16.msra.mxu0 %v4183_v3  ;;  %v4232_v3 = vld [vmem:[%s5641_s4 + $0x60] ss:$8 sps:$4 sm:$0xff]  }
  0x98   :  { %965 = vmatprep.subr.bf16.mxu0 %v4202_v2  ;;  %v4244_v2 = vld [vmem:[%s5641_s4 + $0x74] ss:$8 sps:$4 sm:$0xff]   ;;  %1223 = vmatpush1.bf16.msra.mxu1 %v4232_v3 }
  0x99   :  { %1224 = vmatprep.subr.bf16.mxu1 %v4244_v2 }
  0x9b   :  { %966 = vmatpush1.bf16.msra.mxu0 %v4214_v5  ;;  %v4256_v5 = vld [vmem:[%s5641_s4 + $0x70] ss:$8 sps:$4 sm:$0xff]  }
  0x9c   :  { %967 = vmatprep.subr.bf16.mxu0 %v4226_v0  ;;  %v4268_v0 = vld [vmem:[%s5641_s4 + $0x84] ss:$8 sps:$4 sm:$0xff]   ;;  %1225 = vmatpush1.bf16.msra.mxu1 %v4256_v5 }
  0x9d   :  { %1226 = vmatprep.subr.bf16.mxu1 %v4268_v0 }
  0x9f   :  { %968 = vmatpush1.bf16.msra.mxu0 %v4238_v63  ;;  %v4280_v63 = vld [vmem:[%s5641_s4 + $0x80] ss:$8 sps:$4 sm:$0xff]  }
  0xa0   :  { %969 = vmatprep.subr.bf16.mxu0 %v4250_v62  ;;  %v4292_v62 = vld [vmem:[%s5641_s4 + $0x94] ss:$8 sps:$4 sm:$0xff]   ;;  %1227 = vmatpush1.bf16.msra.mxu1 %v4280_v63 }
  0xa1   :  { %1228 = vmatprep.subr.bf16.mxu1 %v4292_v62 }
  0xa3   :  { %970 = vmatpush1.bf16.msra.mxu0 %v4262_v61  ;;  %v4304_v61 = vld [vmem:[%s5641_s4 + $0x90] ss:$8 sps:$4 sm:$0xff]  }
  0xa4   :  { %971 = vmatprep.subr.bf16.mxu0 %v4274_v60  ;;  %v4316_v60 = vld [vmem:[%s5641_s4 + $0xa4] ss:$8 sps:$4 sm:$0xff]   ;;  %1229 = vmatpush1.bf16.msra.mxu1 %v4304_v61 }
  0xa5   :  { %1230 = vmatprep.subr.bf16.mxu1 %v4316_v60 }
  0xa7   :  { %972 = vmatpush1.bf16.msra.mxu0 %v4286_v59  ;;  %v4328_v59 = vld [vmem:[%s5641_s4 + $0xa0] ss:$8 sps:$4 sm:$0xff]  }
  0xa8   :  { %973 = vmatprep.subr.bf16.mxu0 %v4298_v58  ;;  %v4340_v58 = vld [vmem:[%s5641_s4 + $0xb4] ss:$8 sps:$4 sm:$0xff]   ;;  %1231 = vmatpush1.bf16.msra.mxu1 %v4328_v59 }
  0xa9   :  { %1232 = vmatprep.subr.bf16.mxu1 %v4340_v58 }
  0xab   :  { %974 = vmatpush1.bf16.msra.mxu0 %v4310_v57  ;;  %v4352_v57 = vld [vmem:[%s5641_s4 + $0xb0] ss:$8 sps:$4 sm:$0xff]  }
  0xac   :  { %975 = vmatprep.subr.bf16.mxu0 %v4322_v56  ;;  %v4364_v56 = vld [vmem:[%s5641_s4 + $0xc4] ss:$8 sps:$4 sm:$0xff]   ;;  %1233 = vmatpush1.bf16.msra.mxu1 %v4352_v57 }
  0xad   :  { %1234 = vmatprep.subr.bf16.mxu1 %v4364_v56 }
  0xaf   :  { %976 = vmatpush1.bf16.msra.mxu0 %v4334_v55  ;;  %v4376_v55 = vld [vmem:[%s5641_s4 + $0xc0] ss:$8 sps:$4 sm:$0xff]  }
  0xb0   :  { %977 = vmatprep.subr.bf16.mxu0 %v4346_v54  ;;  %v4388_v54 = vld [vmem:[%s5641_s4 + $0xd4] ss:$8 sps:$4 sm:$0xff]   ;;  %1235 = vmatpush1.bf16.msra.mxu1 %v4376_v55 }
  0xb1   :  { %1236 = vmatprep.subr.bf16.mxu1 %v4388_v54 }
  0xb3   :  { %978 = vmatpush1.bf16.msra.mxu0 %v4358_v53  ;;  %v4400_v53 = vld [vmem:[%s5641_s4 + $0xd0] ss:$8 sps:$4 sm:$0xff]  }
  0xb4   :  { %979 = vmatprep.subr.bf16.mxu0 %v4370_v52  ;;  %v4413_v52 = vld [vmem:[%s5639_s2 + $0x2f4] ss:$8 sps:$4 sm:$0xff]   ;;  %1237 = vmatpush1.bf16.msra.mxu1 %v4400_v53 }
  0xb5   :  { %5799 = vst [vmem:[#allocation55_spill] sm:$0xff] %v4413_v52 }
  0xb7   :  { %980 = vmatpush1.bf16.msra.mxu0 %v4382_v51  ;;  %v4420_v51 = vld [vmem:[%s5639_s2 + $0x2f0] ss:$8 sps:$4 sm:$0xff]  }
  0xb8   :  { %981 = vmatprep.subr.bf16.mxu0 %v4394_v50  ;;  %v4426_v50 = vld [vmem:[%s5639_s2 + $0x304] ss:$8 sps:$4 sm:$0xff]  }
  0xb9   :  { %5800 = vst [vmem:[#allocation56_spill] sm:$0xff] %v4426_v50 }
  0xbb   :  { %982 = vmatpush1.bf16.msra.mxu0 %v4406_v49  ;;  %v2915_v49 = vcombine.low %v4062_v6, %v4062_v6  ;;  %v4453_v6 = vld [vmem:[%s5639_s2 + $0x310] ss:$8 sps:$4 sm:$0xff]  }
  0xbc   :  { %983 = vmatprep.subr.bf16.mxu0 %v4413_v52  ;;  %v2918_v52 = vcombine.high %v4431_v48, %v4431_v48  ;;  %5802 = vst [vmem:[#allocation58_spill] sm:$0xff] %v4453_v6 }
  0xbf   :  { %984 = vmatpush1.bf16.msra.mxu0 %v4420_v51 }
  0xc0   :  { %994 = vmatprep.subr.bf16.mxu0 %v4426_v50  ;;  %v4459_v50 = vld [vmem:[%s5639_s2 + $0x324] ss:$8 sps:$4 sm:$0xff]  }
  0xc1   :  { %5803 = vst [vmem:[#allocation59_spill] sm:$0xff] %v4459_v50 }
  0xc2   :  { %986 = vmatmul.mubr.bf16.vlgmr.msra.gmra.mrb[0].mxu0 %v2915_v49  ;;  %v4465_v49 = vld [vmem:[%s5639_s2 + $0x320] ss:$8 sps:$4 sm:$0xff]  }
  0xc3   :  { %995 = vmatpush1.bf16.msra.mxu0 %v4439_v47  ;;  %1026 = vmatprep.mubr.bf16.mxu0 %v2918_v52  ;;  %5804 = vst [vmem:[#allocation60_spill] sm:$0xff] %v4465_v49  ;;  %v4471_v52 = vld [vmem:[%s5639_s2 + $0x334] ss:$8 sps:$4 sm:$0xff]  }
  0xc4   :  { %996 = vmatprep.subr.bf16.mxu0 %v4447_v46  ;;  %5805 = vst [vmem:[#allocation61_spill] sm:$0xff] %v4471_v52  ;;  %v4477_v46 = vld [vmem:[%s5639_s2 + $0x330] ss:$8 sps:$4 sm:$0xff]  }
  0xc5   :  { %5806 = vst [vmem:[#allocation62_spill] sm:$0xff] %v4477_v46 }
  0xc7   :  { %997 = vmatpush1.bf16.msra.mxu0 %v4453_v6  ;;  %v4483_v6 = vld [vmem:[%s5639_s2 + $0x344] ss:$8 sps:$4 sm:$0xff]  }
  0xc8   :  { %998 = vmatprep.subr.bf16.mxu0 %v4459_v50  ;;  %5807 = vst [vmem:[#allocation63_spill] sm:$0xff] %v4483_v6  ;;  %v4489_v50 = vld [vmem:[%s5639_s2 + $0x340] ss:$8 sps:$4 sm:$0xff]  }
  0xc9   :  { %5808 = vst [vmem:[#allocation64_spill] sm:$0xff] %v4489_v50 }
  0xcb   :  { %999 = vmatpush1.bf16.msra.mxu0 %v4465_v49  ;;  %v4495_v49 = vld [vmem:[%s5639_s2 + $0x354] ss:$8 sps:$4 sm:$0xff]  }
  0xcc   :  { %1000 = vmatprep.subr.bf16.mxu0 %v4471_v52  ;;  %5809 = vst [vmem:[#allocation65_spill] sm:$0xff] %v4495_v49  ;;  %v4501_v52 = vld [vmem:[%s5639_s2 + $0x350] ss:$8 sps:$4 sm:$0xff]  }
  0xcd   :  { %5810 = vst [vmem:[#allocation66_spill] sm:$0xff] %v4501_v52 }
  0xcf   :  { %1001 = vmatpush1.bf16.msra.mxu0 %v4477_v46  ;;  %v4507_v46 = vld [vmem:[%s5639_s2 + $0x364] ss:$8 sps:$4 sm:$0xff]  }
  0xd0   :  { %1002 = vmatprep.subr.bf16.mxu0 %v4483_v6  ;;  %5811 = vst [vmem:[#allocation67_spill] sm:$0xff] %v4507_v46  ;;  %v4513_v6 = vld [vmem:[%s5639_s2 + $0x360] ss:$8 sps:$4 sm:$0xff]  }
  0xd1   :  { %5812 = vst [vmem:[#allocation68_spill] sm:$0xff] %v4513_v6 }
  0xd3   :  { %1003 = vmatpush1.bf16.msra.mxu0 %v4489_v50  ;;  %v4519_v50 = vld [vmem:[%s5639_s2 + $0x374] ss:$8 sps:$4 sm:$0xff]  }
  0xd4   :  { %1004 = vmatprep.subr.bf16.mxu0 %v4495_v49  ;;  %5813 = vst [vmem:[#allocation69_spill] sm:$0xff] %v4519_v50  ;;  %v4525_v49 = vld [vmem:[%s5639_s2 + $0x370] ss:$8 sps:$4 sm:$0xff]  }
  0xd5   :  { %5814 = vst [vmem:[#allocation70_spill] sm:$0xff] %v4525_v49 }
  0xd7   :  { %1005 = vmatpush1.bf16.msra.mxu0 %v4501_v52  ;;  %v4531_v52 = vld [vmem:[%s5639_s2 + $0x384] ss:$8 sps:$4 sm:$0xff]  }
  0xd8   :  { %1006 = vmatprep.subr.bf16.mxu0 %v4507_v46  ;;  %5815 = vst [vmem:[#allocation71_spill] sm:$0xff] %v4531_v52  ;;  %v4537_v46 = vld [vmem:[%s5639_s2 + $0x380] ss:$8 sps:$4 sm:$0xff]  }
  0xd9   :  { %5816 = vst [vmem:[#allocation72_spill] sm:$0xff] %v4537_v46 }
  0xdb   :  { %1007 = vmatpush1.bf16.msra.mxu0 %v4513_v6  ;;  %v4543_v6 = vld [vmem:[%s5639_s2 + $0x394] ss:$8 sps:$4 sm:$0xff]  }
  0xdc   :  { %1008 = vmatprep.subr.bf16.mxu0 %v4519_v50  ;;  %5817 = vst [vmem:[#allocation73_spill] sm:$0xff] %v4543_v6  ;;  %v4549_v50 = vld [vmem:[%s5639_s2 + $0x390] ss:$8 sps:$4 sm:$0xff]  }
  0xdd   :  { %5818 = vst [vmem:[#allocation74_spill] sm:$0xff] %v4549_v50 }
  0xdf   :  { %1009 = vmatpush1.bf16.msra.mxu0 %v4525_v49  ;;  %v4555_v49 = vld [vmem:[%s5639_s2 + $0x3a4] ss:$8 sps:$4 sm:$0xff]  }
  0xe0   :  { %1010 = vmatprep.subr.bf16.mxu0 %v4531_v52  ;;  %5819 = vst [vmem:[#allocation75_spill] sm:$0xff] %v4555_v49  ;;  %v4561_v52 = vld [vmem:[%s5639_s2 + $0x3a0] ss:$8 sps:$4 sm:$0xff]  }
  0xe1   :  { %5820 = vst [vmem:[#allocation76_spill] sm:$0xff] %v4561_v52 }
  0xe3   :  { %1011 = vmatpush1.bf16.msra.mxu0 %v4537_v46  ;;  %v4567_v46 = vld [vmem:[%s5639_s2 + $0x3b4] ss:$8 sps:$4 sm:$0xff]  }
  0xe4   :  { %1012 = vmatprep.subr.bf16.mxu0 %v4543_v6  ;;  %5821 = vst [vmem:[#allocation77_spill] sm:$0xff] %v4567_v46  ;;  %v4573_v6 = vld [vmem:[%s5639_s2 + $0x3b0] ss:$8 sps:$4 sm:$0xff]  }
  0xe5   :  { %5822 = vst [vmem:[#allocation78_spill] sm:$0xff] %v4573_v6 }
  0xe7   :  { %1013 = vmatpush1.bf16.msra.mxu0 %v4549_v50  ;;  %v4579_v50 = vld [vmem:[%s5639_s2 + $0x3c4] ss:$8 sps:$4 sm:$0xff]  }
  0xe8   :  { %1014 = vmatprep.subr.bf16.mxu0 %v4555_v49  ;;  %5823 = vst [vmem:[#allocation79_spill] sm:$0xff] %v4579_v50  ;;  %v4585_v49 = vld [vmem:[%s5639_s2 + $0x3c0] ss:$8 sps:$4 sm:$0xff]  }
  0xe9   :  { %5824 = vst [vmem:[#allocation80_spill] sm:$0xff] %v4585_v49 }
  0xeb   :  { %1015 = vmatpush1.bf16.msra.mxu0 %v4561_v52  ;;  %v4591_v52 = vld [vmem:[%s5639_s2 + $0x3d4] ss:$8 sps:$4 sm:$0xff]  }
  0xec   :  { %1016 = vmatprep.subr.bf16.mxu0 %v4567_v46  ;;  %5825 = vst [vmem:[#allocation81_spill] sm:$0xff] %v4591_v52  ;;  %v4597_v46 = vld [vmem:[%s5639_s2 + $0x3d0] ss:$8 sps:$4 sm:$0xff]  }
  0xed   :  { %5826 = vst [vmem:[#allocation82_spill] sm:$0xff] %v4597_v46 }
  0xef   :  { %1017 = vmatpush1.bf16.msra.mxu0 %v4573_v6  ;;  %v4603_v6 = vld [vmem:[%s5639_s2 + $0x3e4] ss:$8 sps:$4 sm:$0xff]  }
  0xf0   :  { %1018 = vmatprep.subr.bf16.mxu0 %v4579_v50  ;;  %v4609_v50 = vld [vmem:[%s5639_s2 + $0x3e0] ss:$8 sps:$4 sm:$0xff]  }
  0xf3   :  { %1019 = vmatpush1.bf16.msra.mxu0 %v4585_v49  ;;  %v4615_v49 = vld [vmem:[%s5639_s2 + $0x3f4] ss:$8 sps:$4 sm:$0xff]  }
  0xf4   :  { %1020 = vmatprep.subr.bf16.mxu0 %v4591_v52  ;;  %v4621_v52 = vld [vmem:[%s5639_s2 + $0x3f0] ss:$8 sps:$4 sm:$0xff]  }
  0xf7   :  { %1021 = vmatpush1.bf16.msra.mxu0 %v4597_v46  ;;  %v2917_v46 = vcombine.low %v4431_v48, %v4431_v48  ;;  %v3578_v48 = vld [vmem:[%s5641_s4 + $0xe0] ss:$8 sps:$4 sm:$0xff]  }
  0xf8   :  { %1022 = vmatprep.subr.bf16.mxu0 %v4603_v6 }
  0xfb   :  { %1023 = vmatpush1.bf16.msra.mxu0 %v4609_v50 }
  0xfc   :  { %1024 = vmatprep.subr.bf16.mxu0 %v4615_v49 }
  0xff   :  { %1025 = vmatpush1.bf16.msra.mxu0 %v4621_v52 }
 0x100   :  { %2135 = vmatprep.subr.bf16.mxu0 %v4094_v13 }
 0x102   :  { %1027 = vmatmul.mubr.bf16.vlgmr.msra.gmra.mrb[0].mxu0 %v2917_v46  ;;  %v3576_v46 = vld [vmem:[%s5641_s4 + $0xe4] ss:$8 sps:$4 sm:$0xff]  }
 0x103   :  { %2136 = vmatpush1.bf16.msra.mxu0 %v4100_v14  ;;  %1238 = vmatprep.subr.bf16.mxu1 %v3576_v46 }
 0x104   :  { %2137 = vmatprep.subr.bf16.mxu0 %v4106_v35  ;;  %1239 = vmatpush1.bf16.msra.mxu1 %v3578_v48  ;;  %v3647_v35 = vld [vmem:[%s5639_s2] ss:$8 sps:$4 sm:$0xff]  }
 0x107   :  { %2138 = vmatpush1.bf16.msra.mxu0 %v4117_v38  ;;  %v3649_v38 = vld [vmem:[%s5639_s2 + $0x10] ss:$8 sps:$4 sm:$0xff]  }
 0x108   :  { %2139 = vmatprep.subr.bf16.mxu0 %v4124_v7  ;;  %v3650_v7 = vld [vmem:[%s5639_s2 + $0x24] ss:$8 sps:$4 sm:$0xff]  }
 0x10b   :  { %2140 = vmatpush1.bf16.msra.mxu0 %v4141_v11 }
 0x10c   :  { %2141 = vmatprep.subr.bf16.mxu0 %v4148_v12 }
 0x10f   :  { %2142 = vmatpush1.bf16.msra.mxu0 %v4165_v36  ;;  %v3648_v36 = vld [vmem:[%s5639_s2 + $0x14] ss:$8 sps:$4 sm:$0xff]  }
 0x110   :  { %2143 = vmatprep.subr.bf16.mxu0 %v4172_v9  ;;  %v3651_v9 = vld [vmem:[%s5639_s2 + $0x20] ss:$8 sps:$4 sm:$0xff]  }
 0x113   :  { %2144 = vmatpush1.bf16.msra.mxu0 %v4189_v10  ;;  %v1255_v10 = vld [vmem:[%s5643_s6 + $0x20] sm:$0xff] }
 0x114   :  { %2145 = vmatprep.subr.bf16.mxu0 %v4196_v8  ;;  %v1251_v8 = vld [vmem:[%s5643_s6] sm:$0xff] }
 0x115   :  { %v3080_v13 = vcombine.high %v1251_v8, %v1255_v10 }
 0x117   :  { %2146 = vmatpush1.bf16.msra.mxu0 %v4207_v1 }
 0x118   :  { %2147 = vmatprep.subr.bf16.mxu0 %v4220_v4 }
 0x11b   :  { %2148 = vmatpush1.bf16.msra.mxu0 %v4232_v3 }
 0x11c   :  { %2149 = vmatprep.subr.bf16.mxu0 %v4244_v2 }
 0x11f   :  { %2150 = vmatpush1.bf16.msra.mxu0 %v4256_v5 }
 0x120   :  { %2151 = vmatprep.subr.bf16.mxu0 %v4268_v0 }
 0x123   :  { %2152 = vmatpush1.bf16.msra.mxu0 %v4280_v63 }
 0x124   :  { %2153 = vmatprep.subr.bf16.mxu0 %v4292_v62 }
 0x127   :  { %2154 = vmatpush1.bf16.msra.mxu0 %v4304_v61 }
 0x128   :  { %2155 = vmatprep.subr.bf16.mxu0 %v4316_v60 }
 0x12b   :  { %2156 = vmatpush1.bf16.msra.mxu0 %v4328_v59  ;;  %v154_v59 = vld [vmem:[%s5642_s3] sm:$0x3] }
 0x12c   :  { %2157 = vmatprep.subr.bf16.mxu0 %v4340_v58 }
 0x12f   :  { %2158 = vmatpush1.bf16.msra.mxu0 %v4352_v57 }
 0x130   :  { %2159 = vmatprep.subr.bf16.mxu0 %v4364_v56  ;;  %v193_v56 = vlaneseq }
 0x132   :  { %v4670_v57 = vshrl.u32 %v193_v56, 7  ;;  %v3657_v56 = vld [vmem:[%s5639_s2 + $0x50] ss:$8 sps:$4 sm:$0xff]  }
 0x133   :  { %2160 = vmatpush1.bf16.msra.mxu0 %v4376_v55  ;;  %v3579_v55 = vld [vmem:[%s5641_s4 + $0xf4] ss:$8 sps:$4 sm:$0xff]  }
 0x134   :  { %2161 = vmatprep.subr.bf16.mxu0 %v4388_v54  ;;  %1240 = vmatprep.subr.bf16.mxu1 %v3579_v55  ;;  %v3646_v54 = vld [vmem:[%s5639_s2 + $0x4] ss:$8 sps:$4 sm:$0xff]   ;;  %v195_v58 = vsub.s32 0, %v4670_v57  ;;  %v199_v60 = vsub.s32 1, %v4670_v57 }
 0x136   :  { %v4679_v61 = vrot.slane %v154_v59, %v195_v58  ;;  %v4683_v62 = vrot.slane %v154_v59, %v199_v60  ;;  %v3658_v59 = vld [vmem:[%s5639_s2 + $0x64] ss:$8 sps:$4 sm:$0xff]  }
 0x137   :  { %2162 = vmatpush1.bf16.msra.mxu0 %v4400_v53  ;;  %v3581_v53 = vld [vmem:[%s5641_s4 + $0xf0] ss:$8 sps:$4 sm:$0xff]  }
 0x138   :  { %2163 = vmatprep.subr.bf16.mxu0 %v3576_v46  ;;  %1241 = vmatpush1.bf16.msra.mxu1 %v3581_v53  ;;  %v3652_v46 = vld [vmem:[%s5639_s2 + $0x34] ss:$8 sps:$4 sm:$0xff]  }
 0x139   :  { %1635 = vmatprep.subr.bf16.mxu1 %v3646_v54  ;;  %v3656_v54 = vld [vmem:[%s5639_s2 + $0x54] ss:$8 sps:$4 sm:$0xff]  }
 0x13b   :  { %2164 = vmatpush1.bf16.msra.mxu0 %v3578_v48  ;;  %v3653_v48 = vld [vmem:[%s5639_s2 + $0x30] ss:$8 sps:$4 sm:$0xff]  }
 0x13c   :  { %2165 = vmatprep.subr.bf16.mxu0 %v3579_v55  ;;  %v3654_v55 = vld [vmem:[%s5639_s2 + $0x44] ss:$8 sps:$4 sm:$0xff]  }
 0x13f   :  { %2166 = vmatpush1.bf16.msra.mxu0 %v3581_v53  ;;  %v3655_v53 = vld [vmem:[%s5639_s2 + $0x40] ss:$8 sps:$4 sm:$0xff]  }
 0x1d5   :  { %v1028_v63 = vpop.f32.mrb[0].mxu0 }
 0x1d6   :  { %v3191_v0 = vadd.f32 %v1028_v63, %v4679_v61  ;;  %v1030_v1 = vpop.f32.mrb[1].mxu0  ;;  %v5835_v63 = vld [vmem:[#allocation10_spill] sm:$0xff] }
 0x1d7   :  { %v3192_v2 = vadd.f32 %v1030_v1, %v4683_v62  ;;  %v1032_v3 = vpop.f32.mrb[2].mxu0  ;;  %v1299_v1 = vld [vmem:[%s5643_s6 + $0x180] sm:$0xff] }
 0x1d8   :  { %v1035_v4 = vmax.f32 %v3191_v0, 0.0  ;;  %v1033_v5 = vpop.f32.mrb[3].mxu0  ;;  %v5836_v0 = vld [vmem:[#allocation11_spill] sm:$0xff] }
 0x1d9   :  { %v1036_v11 = vmax.f32 %v3192_v2, 0.0  ;;  %v1303_v2 = vld [vmem:[%s5643_s6 + $0x1a0] sm:$0xff] }
 0x1da   :  { %v1037_v14 = vpack.c.bf16 %v1035_v4, %v1035_v4  ;;  %v5837_v4 = vld [vmem:[#allocation12_spill] sm:$0xff]  ;;  %v3128_v5 = vcombine.high %v1299_v1, %v1303_v2 }
 0x1db   :  { %v1038_v12 = vpack.c.bf16 %v1036_v11, %v1036_v11  ;;  %v5840_v11 = vld [vmem:[#allocation15_spill] sm:$0xff] }
 0x1dd   :  { %1242 = vmatprep.mubr.bf16.mxu1 %v1038_v12  ;;  %v1307_v12 = vld [vmem:[%s5643_s6 + $0x1c0] sm:$0xff] }
 0x1de   :  { %1243 = vmatmul.mubr.bf16.vlgmr.msra.gmra.mrb[0].mxu1 %v1037_v14  ;;  %v3127_v14 = vcombine.low %v1299_v1, %v1303_v2  ;;  %v5862_v1 = vld [vmem:[#allocation37_spill] sm:$0xff]  ;;  %v5863_v2 = vld [vmem:[#allocation38_spill] sm:$0xff] }
 0x1df   :  { %1636 = vmatpush1.bf16.msra.mxu1 %v3647_v35  ;;  %1667 = vmatprep.mubr.bf16.mxu1 %v3080_v13  ;;  %v1311_v13 = vld [vmem:[%s5643_s6 + $0x1e0] sm:$0xff]  ;;  %v5841_v35 = vld [vmem:[#allocation16_spill] sm:$0xff] }
 0x1e0   :  { %1637 = vmatprep.subr.bf16.mxu1 %v3648_v36  ;;  %v3136_v36 = vcombine.high %v1307_v12, %v1311_v13 }
 0x1e3   :  { %1638 = vmatpush1.bf16.msra.mxu1 %v3649_v38  ;;  %v5842_v38 = vld [vmem:[#allocation17_spill] sm:$0xff] }
 0x1e4   :  { %1639 = vmatprep.subr.bf16.mxu1 %v3650_v7  ;;  %v5843_v7 = vld [vmem:[#allocation18_spill] sm:$0xff] }
 0x1e7   :  { %1640 = vmatpush1.bf16.msra.mxu1 %v3651_v9  ;;  %v5844_v9 = vld [vmem:[#allocation19_spill] sm:$0xff] }
 0x1e8   :  { %1641 = vmatprep.subr.bf16.mxu1 %v3652_v46  ;;  %v1252_v46 = vld [vmem:[%s5643_s6 + $0x8] sm:$0xff] }
 0x1eb   :  { %1642 = vmatpush1.bf16.msra.mxu1 %v3653_v48  ;;  %v1256_v48 = vld [vmem:[%s5643_s6 + $0x28] sm:$0xff] }
 0x1ec   :  { %1643 = vmatprep.subr.bf16.mxu1 %v3654_v55  ;;  %v3135_v55 = vcombine.low %v1307_v12, %v1311_v13  ;;  %v5866_v12 = vld [vmem:[#allocation41_spill] sm:$0xff]  ;;  %v5867_v13 = vld [vmem:[#allocation42_spill] sm:$0xff] }
 0x1ef   :  { %1644 = vmatpush1.bf16.msra.mxu1 %v3655_v53  ;;  %v5845_v53 = vld [vmem:[#allocation20_spill] sm:$0xff] }
 0x1f0   :  { %1645 = vmatprep.subr.bf16.mxu1 %v3656_v54  ;;  %v3082_v54 = vcombine.high %v1252_v46, %v1256_v48 }
 0x1f3   :  { %1646 = vmatpush1.bf16.msra.mxu1 %v3657_v56  ;;  %v5846_v56 = vld [vmem:[#allocation21_spill] sm:$0xff] }
 0x1f4   :  { %1647 = vmatprep.subr.bf16.mxu1 %v3658_v59  ;;  %v5847_v59 = vld [vmem:[#allocation22_spill] sm:$0xff] }
 0x1f7   :  { %1648 = vmatpush1.bf16.msra.mxu1 %v3745_v15  ;;  %v1259_v15 = vld [vmem:[%s5643_s6 + $0x40] sm:$0xff] }
 0x1f8   :  { %1649 = vmatprep.subr.bf16.mxu1 %v3750_v16  ;;  %v1263_v16 = vld [vmem:[%s5643_s6 + $0x60] sm:$0xff] }
 0x1fb   :  { %1650 = vmatpush1.bf16.msra.mxu1 %v3756_v17  ;;  %v3079_v17 = vcombine.low %v1251_v8, %v1255_v10  ;;  %v5838_v8 = vld [vmem:[#allocation13_spill] sm:$0xff]  ;;  %v5839_v10 = vld [vmem:[#allocation14_spill] sm:$0xff] }
 0x1fc   :  { %1651 = vmatprep.subr.bf16.mxu1 %v3762_v18  ;;  %v3088_v18 = vcombine.high %v1259_v15, %v1263_v16 }
 0x1ff   :  { %1652 = vmatpush1.bf16.msra.mxu1 %v3768_v19  ;;  %v1267_v19 = vld [vmem:[%s5643_s6 + $0x80] sm:$0xff] }
 0x200   :  { %1653 = vmatprep.subr.bf16.mxu1 %v3774_v20  ;;  %v1271_v20 = vld [vmem:[%s5643_s6 + $0xa0] sm:$0xff] }
 0x203   :  { %1654 = vmatpush1.bf16.msra.mxu1 %v3780_v21  ;;  %v3087_v21 = vcombine.low %v1259_v15, %v1263_v16  ;;  %v5848_v15 = vld [vmem:[#allocation23_spill] sm:$0xff] }
 0x204   :  { %1655 = vmatprep.subr.bf16.mxu1 %v3786_v22  ;;  %v3096_v22 = vcombine.high %v1267_v19, %v1271_v20  ;;  %v1260_v16 = vld [vmem:[%s5643_s6 + $0x48] sm:$0xff] }
 0x207   :  { %1656 = vmatpush1.bf16.msra.mxu1 %v3792_v23  ;;  %v1275_v23 = vld [vmem:[%s5643_s6 + $0xc0] sm:$0xff] }
 0x208   :  { %1657 = vmatprep.subr.bf16.mxu1 %v3798_v24  ;;  %v1279_v24 = vld [vmem:[%s5643_s6 + $0xe0] sm:$0xff] }
 0x20b   :  { %1658 = vmatpush1.bf16.msra.mxu1 %v3804_v25  ;;  %v3095_v25 = vcombine.low %v1267_v19, %v1271_v20  ;;  %v5849_v19 = vld [vmem:[#allocation24_spill] sm:$0xff] }
 0x20c   :  { %1659 = vmatprep.subr.bf16.mxu1 %v3810_v26  ;;  %v3104_v26 = vcombine.high %v1275_v23, %v1279_v24 }
 0x20f   :  { %1660 = vmatpush1.bf16.msra.mxu1 %v3816_v27  ;;  %v5827_v27 = vld [vmem:[#allocation2_spill] sm:$0xff] }
 0x210   :  { %1661 = vmatprep.subr.bf16.mxu1 %v3822_v28  ;;  %v5828_v28 = vld [vmem:[#allocation3_spill] sm:$0xff] }
 0x213   :  { %1662 = vmatpush1.bf16.msra.mxu1 %v3828_v29  ;;  %v1283_v29 = vld [vmem:[%s5643_s6 + $0x100] sm:$0xff] }
 0x214   :  { %1663 = vmatprep.subr.bf16.mxu1 %v3834_v30  ;;  %v1287_v30 = vld [vmem:[%s5643_s6 + $0x120] sm:$0xff] }
 0x217   :  { %1664 = vmatpush1.bf16.msra.mxu1 %v3840_v31  ;;  %v3103_v31 = vcombine.low %v1275_v23, %v1279_v24  ;;  %v5852_v23 = vld [vmem:[#allocation27_spill] sm:$0xff] }
 0x218   :  { %1665 = vmatprep.subr.bf16.mxu1 %v3846_v32  ;;  %v5829_v32 = vld [vmem:[#allocation4_spill] sm:$0xff]  ;;  %v1268_v24 = vld [vmem:[%s5643_s6 + $0x88] sm:$0xff] }
 0x21b   :  { %1666 = vmatpush1.bf16.msra.mxu1 %v3852_v33  ;;  %v3112_v33 = vcombine.high %v1283_v29, %v1287_v30 }
 0x21c   :  { %1748 = vmatprep.subr.bf16.mxu1 %v3858_v34  ;;  %v5830_v34 = vld [vmem:[#allocation5_spill] sm:$0xff] }
 0x21e   :  { %1668 = vmatmul.mubr.bf16.vlgmr.msra.gmra.mrb[4].mxu1 %v3079_v17  ;;  %v1264_v17 = vld [vmem:[%s5643_s6 + $0x68] sm:$0xff] }
 0x21f   :  { %1749 = vmatpush1.bf16.msra.mxu1 %v3869_v37  ;;  %1677 = vmatprep.mubr.bf16.mxu1 %v3088_v18  ;;  %v5831_v37 = vld [vmem:[#allocation6_spill] sm:$0xff]  ;;  %v3081_v18 = vcombine.low %v1252_v46, %v1256_v48  ;;  %v3090_v20 = vcombine.high %v1260_v16, %v1264_v17  ;;  %v5870_v46 = vld [vmem:[#allocation45_spill] sm:$0xff] }
 0x220   :  { %1750 = vmatprep.subr.bf16.mxu1 %v3877_v39  ;;  %v5832_v39 = vld [vmem:[#allocation7_spill] sm:$0xff]  ;;  %v5871_v48 = vld [vmem:[#allocation46_spill] sm:$0xff] }
 0x223   :  { %1751 = vmatpush1.bf16.msra.mxu1 %v3883_v40  ;;  %v1291_v40 = vld [vmem:[%s5643_s6 + $0x140] sm:$0xff] }
 0x224   :  { %1752 = vmatprep.subr.bf16.mxu1 %v3888_v41  ;;  %v1295_v41 = vld [vmem:[%s5643_s6 + $0x160] sm:$0xff] }
 0x225   :  { %v3119_v3 = vcombine.low %v1291_v40, %v1295_v41 }
 0x226   :  { %1678 = vmatmul.mubr.bf16.gmra.mrb[8].mxu1 %v3087_v21  ;;  %v5850_v21 = vld [vmem:[#allocation25_spill] sm:$0xff] }
 0x227   :  { %1753 = vmatpush1.bf16.msra.mxu1 %v3895_v42  ;;  %1687 = vmatprep.mubr.bf16.mxu1 %v3096_v22  ;;  %v3111_v42 = vcombine.low %v1283_v29, %v1287_v30  ;;  %v5851_v22 = vld [vmem:[#allocation26_spill] sm:$0xff]  ;;  %v5854_v29 = vld [vmem:[#allocation29_spill] sm:$0xff] }
 0x228   :  { %1754 = vmatprep.subr.bf16.mxu1 %v3900_v43  ;;  %v5833_v43 = vld [vmem:[#allocation8_spill] sm:$0xff]  ;;  %v5855_v30 = vld [vmem:[#allocation30_spill] sm:$0xff] }
 0x22b   :  { %1755 = vmatpush1.bf16.msra.mxu1 %v3907_v44  ;;  %v3120_v44 = vcombine.high %v1291_v40, %v1295_v41  ;;  %v5858_v40 = vld [vmem:[#allocation33_spill] sm:$0xff]  ;;  %v5859_v41 = vld [vmem:[#allocation34_spill] sm:$0xff] }
 0x22c   :  { %1756 = vmatprep.subr.bf16.mxu1 %v3912_v45  ;;  %v5834_v45 = vld [vmem:[#allocation9_spill] sm:$0xff] }
 0x22e   :  { %1688 = vmatmul.mubr.bf16.gmra.mrb[12].mxu1 %v3095_v25  ;;  %v1272_v25 = vld [vmem:[%s5643_s6 + $0xa8] sm:$0xff] }
 0x22f   :  { %1757 = vmatpush1.bf16.msra.mxu1 %v5827_v27  ;;  %1697 = vmatprep.mubr.bf16.mxu1 %v3104_v26  ;;  %v3089_v26 = vcombine.low %v1260_v16, %v1264_v17  ;;  %v5853_v27 = vld [vmem:[#allocation28_spill] sm:$0xff]  ;;  %v5874_v16 = vld [vmem:[#allocation49_spill] sm:$0xff]  ;;  %v5875_v17 = vld [vmem:[#allocation50_spill] sm:$0xff] }
 0x230   :  { %1758 = vmatprep.subr.bf16.mxu1 %v5828_v28  ;;  %v3098_v28 = vcombine.high %v1268_v24, %v1272_v25 }
 0x233   :  { %1759 = vmatpush1.bf16.msra.mxu1 %v5829_v32  ;;  %v1276_v32 = vld [vmem:[%s5643_s6 + $0xc8] sm:$0xff] }
 0x234   :  { %1760 = vmatprep.subr.bf16.mxu1 %v5830_v34  ;;  %v3097_v34 = vcombine.low %v1268_v24, %v1272_v25  ;;  %v5878_v24 = vld [vmem:[#allocation53_spill] sm:$0xff]  ;;  %v5879_v25 = vld [vmem:[#allocation54_spill] sm:$0xff] }
 0x236   :  { %1698 = vmatmul.mubr.bf16.gmra.mrb[16].mxu1 %v3103_v31  ;;  %v5856_v31 = vld [vmem:[#allocation31_spill] sm:$0xff] }
 0x237   :  { %1761 = vmatpush1.bf16.msra.mxu1 %v5831_v37  ;;  %1707 = vmatprep.mubr.bf16.mxu1 %v3112_v33  ;;  %v1280_v33 = vld [vmem:[%s5643_s6 + $0xe8] sm:$0xff]  ;;  %v5857_v37 = vld [vmem:[#allocation32_spill] sm:$0xff] }
 0x238   :  { %1762 = vmatprep.subr.bf16.mxu1 %v5832_v39  ;;  %v3106_v39 = vcombine.high %v1276_v32, %v1280_v33 }
 0x23b   :  { %1763 = vmatpush1.bf16.msra.mxu1 %v5833_v43  ;;  %v1284_v43 = vld [vmem:[%s5643_s6 + $0x108] sm:$0xff] }
 0x23c   :  { %1764 = vmatprep.subr.bf16.mxu1 %v5834_v45  ;;  %v3105_v45 = vcombine.low %v1276_v32, %v1280_v33  ;;  %v5882_v32 = vld [vmem:[#allocation57_spill] sm:$0xff]  ;;  %v1269_v33 = vld [vmem:[%s5643_s6 + $0x90] sm:$0xff] }
 0x23e   :  { %1708 = vmatmul.mubr.bf16.gmra.mrb[20].mxu1 %v3111_v42  ;;  %v5860_v42 = vld [vmem:[#allocation35_spill] sm:$0xff] }
 0x23f   :  { %1765 = vmatpush1.bf16.msra.mxu1 %v5835_v63  ;;  %1717 = vmatprep.mubr.bf16.mxu1 %v3120_v44  ;;  %v1288_v44 = vld [vmem:[%s5643_s6 + $0x128] sm:$0xff]  ;;  %v5861_v63 = vld [vmem:[#allocation36_spill] sm:$0xff] }
 0x240   :  { %1766 = vmatprep.subr.bf16.mxu1 %v5836_v0  ;;  %v3114_v0 = vcombine.high %v1284_v43, %v1288_v44 }
 0x243   :  { %1767 = vmatpush1.bf16.msra.mxu1 %v5837_v4  ;;  %v1292_v4 = vld [vmem:[%s5643_s6 + $0x148] sm:$0xff] }
 0x244   :  { %1768 = vmatprep.subr.bf16.mxu1 %v5838_v8  ;;  %v3113_v8 = vcombine.low %v1284_v43, %v1288_v44  ;;  %v1281_v43 = vld [vmem:[%s5643_s6 + $0xf0] sm:$0xff] }
 0x246   :  { %1718 = vmatmul.mubr.bf16.gmra.mrb[24].mxu1 %v3119_v3  ;;  %v5864_v3 = vld [vmem:[#allocation39_spill] sm:$0xff] }
 0x247   :  { %1769 = vmatpush1.bf16.msra.mxu1 %v5839_v10  ;;  %1727 = vmatprep.mubr.bf16.mxu1 %v3128_v5  ;;  %v1296_v5 = vld [vmem:[%s5643_s6 + $0x168] sm:$0xff]  ;;  %v5865_v10 = vld [vmem:[#allocation40_spill] sm:$0xff] }
 0x248   :  { %1770 = vmatprep.subr.bf16.mxu1 %v5840_v11  ;;  %v3122_v11 = vcombine.high %v1292_v4, %v1296_v5 }
 0x24b   :  { %1771 = vmatpush1.bf16.msra.mxu1 %v5841_v35  ;;  %v1300_v35 = vld [vmem:[%s5643_s6 + $0x188] sm:$0xff] }
 0x24c   :  { %1772 = vmatprep.subr.bf16.mxu1 %v5842_v38  ;;  %v3121_v38 = vcombine.low %v1292_v4, %v1296_v5  ;;  %v5890_v4 = vld [vmem:[#allocation65_spill] sm:$0xff]  ;;  %v1285_v5 = vld [vmem:[%s5643_s6 + $0x110] sm:$0xff] }
 0x24e   :  { %1728 = vmatmul.mubr.bf16.gmra.mrb[28].mxu1 %v3127_v14  ;;  %v5868_v14 = vld [vmem:[#allocation43_spill] sm:$0xff] }
 0x24f   :  { %1773 = vmatpush1.bf16.msra.mxu1 %v5843_v7  ;;  %1737 = vmatprep.mubr.bf16.mxu1 %v3136_v36  ;;  %v1304_v36 = vld [vmem:[%s5643_s6 + $0x1a8] sm:$0xff]  ;;  %v5869_v7 = vld [vmem:[#allocation44_spill] sm:$0xff] }
 0x250   :  { %1774 = vmatprep.subr.bf16.mxu1 %v5844_v9  ;;  %v3130_v9 = vcombine.high %v1300_v35, %v1304_v36 }
 0x253   :  { %1775 = vmatpush1.bf16.msra.mxu1 %v5845_v53  ;;  %v1308_v53 = vld [vmem:[%s5643_s6 + $0x1c8] sm:$0xff] }
 0x254   :  { %1776 = vmatprep.subr.bf16.mxu1 %v5846_v56  ;;  %v3129_v56 = vcombine.low %v1300_v35, %v1304_v36 }
 0x256   :  { %1738 = vmatmul.mubr.bf16.gmra.mrb[32].mxu1 %v3135_v55  ;;  %v5872_v55 = vld [vmem:[#allocation47_spill] sm:$0xff] }
 0x257   :  { %1777 = vmatpush1.bf16.msra.mxu1 %v5847_v59  ;;  %1780 = vmatprep.mubr.bf16.mxu1 %v3082_v54  ;;  %v1312_v54 = vld [vmem:[%s5643_s6 + $0x1e8] sm:$0xff]  ;;  %v5873_v59 = vld [vmem:[#allocation48_spill] sm:$0xff] }
 0x258   :  { %1778 = vmatprep.subr.bf16.mxu1 %v5848_v15  ;;  %v3138_v15 = vcombine.high %v1308_v53, %v1312_v54 }
 0x25b   :  { %1779 = vmatpush1.bf16.msra.mxu1 %v5849_v19  ;;  %v1253_v19 = vld [vmem:[%s5643_s6 + $0x10] sm:$0xff] }
 0x25c   :  { %1861 = vmatprep.subr.bf16.mxu1 %v5850_v21  ;;  %v3137_v21 = vcombine.low %v1308_v53, %v1312_v54  ;;  %v5895_v53 = vld [vmem:[#allocation70_spill] sm:$0xff] }
 0x25e   :  { %1781 = vmatmul.mubr.bf16.vlgmr.msra.gmra.mrb[4].mxu1 %v3081_v18  ;;  %v5876_v18 = vld [vmem:[#allocation51_spill] sm:$0xff] }
 0x25f   :  { %1862 = vmatpush1.bf16.msra.mxu1 %v5851_v22  ;;  %1790 = vmatprep.mubr.bf16.mxu1 %v3090_v20  ;;  %v1257_v20 = vld [vmem:[%s5643_s6 + $0x30] sm:$0xff] }
 0x260   :  { %1863 = vmatprep.subr.bf16.mxu1 %v5852_v23  ;;  %v5877_v22 = vld [vmem:[#allocation52_spill] sm:$0xff]  ;;  %v3084_v23 = vcombine.high %v1253_v19, %v1257_v20 }
 0x263   :  { %1864 = vmatpush1.bf16.msra.mxu1 %v5853_v27  ;;  %v1261_v27 = vld [vmem:[%s5643_s6 + $0x50] sm:$0xff] }
 0x264   :  { %1865 = vmatprep.subr.bf16.mxu1 %v5854_v29  ;;  %v3083_v29 = vcombine.low %v1253_v19, %v1257_v20  ;;  %v5899_v19 = vld [vmem:[#allocation74_spill] sm:$0xff] }
 0x266   :  { %1791 = vmatmul.mubr.bf16.gmra.mrb[8].mxu1 %v3089_v26  ;;  %v5880_v26 = vld [vmem:[#allocation55_spill] sm:$0xff] }
 0x267   :  { %1866 = vmatpush1.bf16.msra.mxu1 %v5855_v30  ;;  %1800 = vmatprep.mubr.bf16.mxu1 %v3098_v28  ;;  %v1265_v28 = vld [vmem:[%s5643_s6 + $0x70] sm:$0xff] }
 0x268   :  { %1867 = vmatprep.subr.bf16.mxu1 %v5856_v31  ;;  %v3092_v30 = vcombine.high %v1261_v27, %v1265_v28  ;;  %v5881_v31 = vld [vmem:[#allocation56_spill] sm:$0xff] }
 0x26b   :  { %1868 = vmatpush1.bf16.msra.mxu1 %v5857_v37  ;;  %v3091_v37 = vcombine.low %v1261_v27, %v1265_v28  ;;  %v5903_v27 = vld [vmem:[#allocation78_spill] sm:$0xff] }
 0x26c   :  { %1869 = vmatprep.subr.bf16.mxu1 %v5858_v40  ;;  %v5884_v40 = vld [vmem:[#allocation59_spill] sm:$0xff] }
 0x26e   :  { %1801 = vmatmul.mubr.bf16.gmra.mrb[12].mxu1 %v3097_v34  ;;  %v1273_v34 = vld [vmem:[%s5643_s6 + $0xb0] sm:$0xff] }
 0x26f   :  { %1870 = vmatpush1.bf16.msra.mxu1 %v5859_v41  ;;  %1810 = vmatprep.mubr.bf16.mxu1 %v3106_v39  ;;  %v5883_v39 = vld [vmem:[#allocation58_spill] sm:$0xff]  ;;  %v5885_v41 = vld [vmem:[#allocation60_spill] sm:$0xff]  ;;  %v3099_v44 = vcombine.low %v1269_v33, %v1273_v34 }
 0x270   :  { %1871 = vmatprep.subr.bf16.mxu1 %v5860_v42  ;;  %v1277_v42 = vld [vmem:[%s5643_s6 + $0xd0] sm:$0xff] }
 0x273   :  { %1872 = vmatpush1.bf16.msra.mxu1 %v5861_v63  ;;  %v3108_v63 = vcombine.high %v1277_v42, %v1281_v43 }
 0x274   :  { %1873 = vmatprep.subr.bf16.mxu1 %v5862_v1  ;;  %v4938_v1 = vld [vmem:[%s5644_s5] sm:$0x3] }
 0x276   :  { %1811 = vmatmul.mubr.bf16.gmra.mrb[16].mxu1 %v3105_v45  ;;  %v5887_v45 = vld [vmem:[#allocation62_spill] sm:$0xff] }
 0x277   :  { %1874 = vmatpush1.bf16.msra.mxu1 %v5863_v2  ;;  %1820 = vmatprep.mubr.bf16.mxu1 %v3114_v0  ;;  %v5888_v0 = vld [vmem:[#allocation63_spill] sm:$0xff]  ;;  %v5889_v2 = vld [vmem:[#allocation64_spill] sm:$0xff] }
 0x278   :  { %1875 = vmatprep.subr.bf16.mxu1 %v5864_v3  ;;  %v4944_v3 = vrot.slane %v4938_v1, %v199_v60 }
 0x27b   :  { %1876 = vmatpush1.bf16.msra.mxu1 %v5865_v10 }
 0x27c   :  { %1877 = vmatprep.subr.bf16.mxu1 %v5866_v12  ;;  %v3107_v12 = vcombine.low %v1277_v42, %v1281_v43  ;;  %v1278_v43 = vld [vmem:[%s5643_s6 + $0xd8] sm:$0xff] }
 0x27e   :  { %1821 = vmatmul.mubr.bf16.gmra.mrb[20].mxu1 %v3113_v8  ;;  %v1289_v8 = vld [vmem:[%s5643_s6 + $0x130] sm:$0xff] }
 0x27f   :  { %1878 = vmatpush1.bf16.msra.mxu1 %v5867_v13  ;;  %1830 = vmatprep.mubr.bf16.mxu1 %v3122_v11  ;;  %v3116_v35 = vcombine.high %v1285_v5, %v1289_v8 }
 0x280   :  { %1879 = vmatprep.subr.bf16.mxu1 %v5868_v14  ;;  %v5891_v14 = vld [vmem:[#allocation66_spill] sm:$0xff] }
 0x283   :  { %1880 = vmatpush1.bf16.msra.mxu1 %v5869_v7  ;;  %v5893_v7 = vld [vmem:[#allocation68_spill] sm:$0xff] }
 0x284   :  { %1881 = vmatprep.subr.bf16.mxu1 %v5870_v46  ;;  %v1293_v46 = vld [vmem:[%s5643_s6 + $0x150] sm:$0xff] }
 0x286   :  { %1831 = vmatmul.mubr.bf16.gmra.mrb[24].mxu1 %v3121_v38  ;;  %v5892_v38 = vld [vmem:[#allocation67_spill] sm:$0xff] }
 0x287   :  { %1882 = vmatpush1.bf16.msra.mxu1 %v5871_v48  ;;  %1840 = vmatprep.mubr.bf16.mxu1 %v3130_v9  ;;  %v5894_v9 = vld [vmem:[#allocation69_spill] sm:$0xff]  ;;  %v1297_v48 = vld [vmem:[%s5643_s6 + $0x170] sm:$0xff] }
 0x288   :  { %1883 = vmatprep.subr.bf16.mxu1 %v5872_v55  ;;  %v3115_v55 = vcombine.low %v1285_v5, %v1289_v8  ;;  %v3124_v54 = vcombine.high %v1293_v46, %v1297_v48  ;;  %v1294_v5 = vld [vmem:[%s5643_s6 + $0x158] sm:$0xff] }
 0x289   :  { %v1298_v8 = vld [vmem:[%s5643_s6 + $0x178] sm:$0xff] }
 0x28b   :  { %1884 = vmatpush1.bf16.msra.mxu1 %v5873_v59  ;;  %v5897_v59 = vld [vmem:[#allocation72_spill] sm:$0xff] }
 0x28c   :  { %1885 = vmatprep.subr.bf16.mxu1 %v5874_v16  ;;  %v1301_v16 = vld [vmem:[%s5643_s6 + $0x190] sm:$0xff] }
 0x28e   :  { %1841 = vmatmul.mubr.bf16.gmra.mrb[28].mxu1 %v3129_v56  ;;  %v5896_v56 = vld [vmem:[#allocation71_spill] sm:$0xff] }
 0x28f   :  { %1886 = vmatpush1.bf16.msra.mxu1 %v5875_v17  ;;  %1850 = vmatprep.mubr.bf16.mxu1 %v3138_v15  ;;  %v5898_v15 = vld [vmem:[#allocation73_spill] sm:$0xff]  ;;  %v1305_v17 = vld [vmem:[%s5643_s6 + $0x1b0] sm:$0xff] }
 0x290   :  { %1887 = vmatprep.subr.bf16.mxu1 %v5876_v18  ;;  %v3123_v18 = vcombine.low %v1293_v46, %v1297_v48  ;;  %v3132_v20 = vcombine.high %v1301_v16, %v1305_v17 }
 0x293   :  { %1888 = vmatpush1.bf16.msra.mxu1 %v5877_v22  ;;  %v5901_v22 = vld [vmem:[#allocation76_spill] sm:$0xff] }
 0x294   :  { %1889 = vmatprep.subr.bf16.mxu1 %v5878_v24  ;;  %v1309_v24 = vld [vmem:[%s5643_s6 + $0x1d0] sm:$0xff] }
 0x296   :  { %1851 = vmatmul.mubr.bf16.gmra.mrb[32].mxu1 %v3137_v21  ;;  %v5900_v21 = vld [vmem:[#allocation75_spill] sm:$0xff] }
 0x297   :  { %1890 = vmatpush1.bf16.msra.mxu1 %v5879_v25  ;;  %1893 = vmatprep.mubr.bf16.mxu1 %v3084_v23  ;;  %v5902_v23 = vld [vmem:[#allocation77_spill] sm:$0xff]  ;;  %v1313_v25 = vld [vmem:[%s5643_s6 + $0x1f0] sm:$0xff] }
 0x298   :  { %1891 = vmatprep.subr.bf16.mxu1 %v5880_v26  ;;  %v3131_v26 = vcombine.low %v1301_v16, %v1305_v17  ;;  %v3140_v28 = vcombine.high %v1309_v24, %v1313_v25 }
 0x29b   :  { %1892 = vmatpush1.bf16.msra.mxu1 %v4420_v51  ;;  %v3100_v51 = vcombine.high %v1269_v33, %v1273_v34  ;;  %v1258_v33 = vld [vmem:[%s5643_s6 + $0x38] sm:$0xff]  ;;  %v3139_v34 = vcombine.low %v1309_v24, %v1313_v25 }
 0x29c   :  { %1974 = vmatprep.subr.bf16.mxu1 %v5881_v31  ;;  %v5906_v31 = vld [vmem:[#allocation81_spill] sm:$0xff] }
 0x29e   :  { %1894 = vmatmul.mubr.bf16.vlgmr.msra.gmra.mrb[4].mxu1 %v3083_v29  ;;  %v5904_v29 = vld [vmem:[#allocation79_spill] sm:$0xff] }
 0x29f   :  { %1975 = vmatpush1.bf16.msra.mxu1 %v4439_v47  ;;  %1903 = vmatprep.mubr.bf16.mxu1 %v3092_v30  ;;  %v5886_v47 = vld [vmem:[#allocation61_spill] sm:$0xff]  ;;  %v5905_v30 = vld [vmem:[#allocation80_spill] sm:$0xff] }
 0x2a0   :  { %1976 = vmatprep.subr.bf16.mxu1 %v5882_v32  ;;  %v1254_v32 = vld [vmem:[%s5643_s6 + $0x18] sm:$0xff] }
 0x2a3   :  { %1977 = vmatpush1.bf16.msra.mxu1 %v5883_v39  ;;  %v3086_v39 = vcombine.high %v1254_v32, %v1258_v33 }
 0x2a4   :  { %1978 = vmatprep.subr.bf16.mxu1 %v5884_v40  ;;  %v1266_v40 = vld [vmem:[%s5643_s6 + $0x78] sm:$0xff] }
 0x2a6   :  { %1904 = vmatmul.mubr.bf16.gmra.mrb[8].mxu1 %v3091_v37  ;;  %v5907_v37 = vld [vmem:[#allocation82_spill] sm:$0xff] }
 0x2a7   :  { %1979 = vmatpush1.bf16.msra.mxu1 %v5885_v41  ;;  %1913 = vmatprep.mubr.bf16.mxu1 %v3100_v51  ;;  %v1262_v51 = vld [vmem:[%s5643_s6 + $0x58] sm:$0xff]  ;;  %v3085_v41 = vcombine.low %v1254_v32, %v1258_v33 }
 0x2a8   :  { %1980 = vmatprep.subr.bf16.mxu1 %v5886_v47  ;;  %v3094_v47 = vcombine.high %v1262_v51, %v1266_v40 }
 0x2ab   :  { %1981 = vmatpush1.bf16.msra.mxu1 %v5887_v45 }
 0x2ac   :  { %1982 = vmatprep.subr.bf16.mxu1 %v5888_v0  ;;  %v1290_v0 = vld [vmem:[%s5643_s6 + $0x138] sm:$0xff] }
 0x2ae   :  { %1914 = vmatmul.mubr.bf16.gmra.mrb[12].mxu1 %v3099_v44 }
 0x2af   :  { %1983 = vmatpush1.bf16.msra.mxu1 %v5889_v2  ;;  %1923 = vmatprep.mubr.bf16.mxu1 %v3108_v63  ;;  %v1286_v63 = vld [vmem:[%s5643_s6 + $0x118] sm:$0xff] }
 0x2b0   :  { %1984 = vmatprep.subr.bf16.mxu1 %v5890_v4  ;;  %v3118_v4 = vcombine.high %v1286_v63, %v1290_v0 }
 0x2b1   :  { %v4953_v10 = vpop.f32.mrb[0].mxu1 }
 0x2b2   :  { %v1246_v11 = vpop.f32.mrb[1].mxu1 }
 0x2b3   :  { %v1247_v13 = vadd.f32 %v1246_v11, %v4944_v3  ;;  %1985 = vmatpush1.bf16.msra.mxu1 %v5891_v14  ;;  %v1248_v60 = vpop.f32.mrb[2].mxu1  ;;  %v3117_v11 = vcombine.low %v1286_v63, %v1290_v0  ;;  %v1306_v14 = vld [vmem:[%s5643_s6 + $0x1b8] sm:$0xff] }
 0x2b4   :  { %v1249_v36 = vpop.f32.mrb[3].mxu1  ;;  %1986 = vmatprep.subr.bf16.mxu1 %v5892_v38  ;;  %v3125_v60 = vcombine.low %v1294_v5, %v1298_v8  ;;  %v1314_v38 = vld [vmem:[%s5643_s6 + $0x1f8] sm:$0xff] }
 0x2b5   :  { %2313 = vmatprep.subr.mxu0 %v1247_v13  ;;  %v1302_v13 = vld [vmem:[%s5643_s6 + $0x198] sm:$0xff] }
 0x2b6   :  { %1924 = vmatmul.mubr.bf16.gmra.mrb[16].mxu1 %v3107_v12  ;;  %v3126_v12 = vcombine.high %v1294_v5, %v1298_v8  ;;  %v1310_v36 = vld [vmem:[%s5643_s6 + $0x1d8] sm:$0xff] }
 0x2b7   :  { %1987 = vmatpush1.bf16.msra.mxu1 %v5893_v7  ;;  %1933 = vmatprep.mubr.bf16.mxu1 %v3116_v35  ;;  %v3134_v35 = vcombine.high %v1302_v13, %v1306_v14  ;;  %v3133_v7 = vcombine.low %v1302_v13, %v1306_v14  ;;  %v3141_v46 = vcombine.low %v1310_v36, %v1314_v38 }
 0x2b8   :  { %1988 = vmatprep.subr.bf16.mxu1 %v5894_v9  ;;  %v3142_v9 = vcombine.high %v1310_v36, %v1314_v38 }
 0x2bb   :  { %1989 = vmatpush1.bf16.msra.mxu1 %v5895_v53 }
 0x2bc   :  { %1990 = vmatprep.subr.bf16.mxu1 %v5896_v56 }
 0x2be   :  { %1934 = vmatmul.mubr.bf16.gmra.mrb[20].mxu1 %v3115_v55 }
 0x2bf   :  { %1991 = vmatpush1.bf16.msra.mxu1 %v5897_v59  ;;  %1943 = vmatprep.mubr.bf16.mxu1 %v3124_v54 }
 0x2c0   :  { %1992 = vmatprep.subr.bf16.mxu1 %v5898_v15 }
 0x2c3   :  { %1993 = vmatpush1.bf16.msra.mxu1 %v5899_v19  ;;  %v5050_v19 = vrot.slane %v4938_v1, %v195_v58 }
 0x2c4   :  { %1994 = vmatprep.subr.bf16.mxu1 %v5900_v21 }
 0x2c6   :  { %1944 = vmatmul.mubr.bf16.gmra.mrb[24].mxu1 %v3123_v18 }
 0x2c7   :  { %1995 = vmatpush1.bf16.msra.mxu1 %v5901_v22  ;;  %1953 = vmatprep.mubr.bf16.mxu1 %v3132_v20 }
 0x2c8   :  { %1996 = vmatprep.subr.bf16.mxu1 %v5902_v23 }
 0x2cb   :  { %1997 = vmatpush1.bf16.msra.mxu1 %v5903_v27  ;;  %v1245_v27 = vadd.f32 %v4953_v10, %v5050_v19 }
 0x2cc   :  { %1998 = vmatprep.subr.bf16.mxu1 %v5904_v29 }
 0x2ce   :  { %1954 = vmatmul.mubr.bf16.gmra.mrb[28].mxu1 %v3131_v26 }
 0x2cf   :  { %1999 = vmatpush1.bf16.msra.mxu1 %v5905_v30  ;;  %1963 = vmatprep.mubr.bf16.mxu1 %v3140_v28 }
 0x2d0   :  { %2000 = vmatprep.subr.bf16.mxu1 %v5906_v31 }
 0x2d3   :  { %2001 = vmatpush1.bf16.msra.mxu1 %v5907_v37 }
 0x2d4   :  { %2002 = vmatprep.subr.bf16.mxu1 %v4603_v6  ;;  %v1274_v6 = vld [vmem:[%s5643_s6 + $0xb8] sm:$0xff] }
 0x2d6   :  { %1964 = vmatmul.mubr.bf16.gmra.mrb[32].mxu1 %v3139_v34 }
 0x2d7   :  { %2003 = vmatpush1.bf16.msra.mxu1 %v4609_v50  ;;  %2006 = vmatprep.mubr.bf16.mxu1 %v3086_v39  ;;  %v1270_v50 = vld [vmem:[%s5643_s6 + $0x98] sm:$0xff] }
 0x2d8   :  { %2004 = vmatprep.subr.bf16.mxu1 %v4615_v49  ;;  %v3093_v49 = vcombine.low %v1262_v51, %v1266_v40  ;;  %v3102_v42 = vcombine.high %v1270_v50, %v1274_v6  ;;  %v3101_v44 = vcombine.low %v1270_v50, %v1274_v6 }
 0x2db   :  { %2005 = vmatpush1.bf16.msra.mxu1 %v4621_v52  ;;  %v1282_v52 = vld [vmem:[%s5643_s6 + $0xf8] sm:$0xff] }
 0x2dc   :  { %v3110_v45 = vcombine.high %v1278_v43, %v1282_v52  ;;  %v3109_v2 = vcombine.low %v1278_v43, %v1282_v52 }
 0x2de   :  { %2007 = vmatmul.mubr.bf16.vlgmr.msra.gmra.mrb[4].mxu1 %v3085_v41 }
 0x2df   :  { %2016 = vmatprep.mubr.bf16.mxu1 %v3094_v47 }
 0x2e6   :  { %2017 = vmatmul.mubr.bf16.gmra.mrb[8].mxu1 %v3093_v49 }
 0x2e7   :  { %2026 = vmatprep.mubr.bf16.mxu1 %v3102_v42 }
 0x2ee   :  { %2027 = vmatmul.mubr.bf16.gmra.mrb[12].mxu1 %v3101_v44 }
 0x2ef   :  { %2036 = vmatprep.mubr.bf16.mxu1 %v3110_v45 }
 0x2f6   :  { %2037 = vmatmul.mubr.bf16.gmra.mrb[16].mxu1 %v3109_v2 }
 0x2f7   :  { %2046 = vmatprep.mubr.bf16.mxu1 %v3118_v4 }
 0x2fe   :  { %2047 = vmatmul.mubr.bf16.gmra.mrb[20].mxu1 %v3117_v11 }
 0x2ff   :  { %2056 = vmatprep.mubr.bf16.mxu1 %v3126_v12 }
 0x306   :  { %2057 = vmatmul.mubr.bf16.gmra.mrb[24].mxu1 %v3125_v60 }
 0x307   :  { %2066 = vmatprep.mubr.bf16.mxu1 %v3134_v35 }
 0x30e   :  { %2067 = vmatmul.mubr.bf16.gmra.mrb[28].mxu1 %v3133_v7 }
 0x30f   :  { %2076 = vmatprep.mubr.bf16.mxu1 %v3142_v9 }
 0x316   :  { %2077 = vmatmul.mubr.bf16.gmra.mrb[32].mxu1 %v3141_v46 }
 0x3b1   :  { %v2008_v48 = vpop.f32.mrb[4].mxu1 }
 0x3b2   :  { %v3193_v55 = vadd.f32 %v2008_v48, %v4679_v61  ;;  %v2010_v53 = vpop.f32.mrb[5].mxu1 }
 0x3b3   :  { %v3194_v54 = vadd.f32 %v2010_v53, %v4683_v62  ;;  %v2012_v56 = vpop.f32.mrb[6].mxu1 }
 0x3b4   :  { %v3195_v59 = vadd.f32 %v2012_v56, %v4679_v61  ;;  %v2014_v15 = vpop.f32.mrb[7].mxu1  ;;  %v2087_v17 = vmax.f32 %v3193_v55, 0.0 }
 0x3b5   :  { %v3196_v16 = vadd.f32 %v2014_v15, %v4683_v62  ;;  %v2088_v20 = vmax.f32 %v3194_v54, 0.0 }
 0x3b6   :  { %v2089_v18 = vmax.f32 %v3195_v59, 0.0 }
 0x3b7   :  { %v2090_v21 = vmax.f32 %v3196_v16, 0.0 }
 0x3b8   :  { %v2119_v22 = vpack.c.bf16 %v2089_v18, %v2087_v17 }
 0x3b9   :  { %v2120_v23 = vpack.c.bf16 %v2090_v21, %v2088_v20  ;;  %v2018_v24 = vpop.f32.mrb[8].mxu1 }
 0x3ba   :  { %v3197_v25 = vadd.f32 %v2018_v24, %v4679_v61  ;;  %v2020_v26 = vpop.f32.mrb[9].mxu1 }
 0x3bb   :  { %v3198_v28 = vadd.f32 %v2020_v26, %v4683_v62  ;;  %v2022_v29 = vpop.f32.mrb[10].mxu1  ;;  %2167 = vmatprep.mubr.bf16.mxu0 %v2120_v23 }
 0x3bc   :  { %v3199_v57 = vadd.f32 %v2022_v29, %v4679_v61  ;;  %v2024_v30 = vpop.f32.mrb[11].mxu1  ;;  %2168 = vmatmul.mubr.bf16.vlgmr.msra.gmra.mrb[4].mxu0 %v2119_v22  ;;  %v2091_v1 = vmax.f32 %v3197_v25, 0.0 }
 0x3bd   :  { %v3200_v58 = vadd.f32 %v2024_v30, %v4683_v62  ;;  %2314 = vmatpush1.msra.mxu0 %v1245_v27  ;;  %v2092_v32 = vmax.f32 %v3198_v28, 0.0 }
 0x3be   :  { %v2093_v31 = vmax.f32 %v3199_v57, 0.0 }
 0x3bf   :  { %v2094_v33 = vmax.f32 %v3200_v58, 0.0 }
 0x3c0   :  { %v2121_v34 = vpack.c.bf16 %v2093_v31, %v2091_v1 }
 0x3c1   :  { %v2122_v37 = vpack.c.bf16 %v2094_v33, %v2092_v32  ;;  %v2028_v39 = vpop.f32.mrb[12].mxu1 }
 0x3c2   :  { %v3201_v10 = vadd.f32 %v2028_v39, %v4679_v61  ;;  %v2030_v51 = vpop.f32.mrb[13].mxu1 }
 0x3c3   :  { %v3202_v40 = vadd.f32 %v2030_v51, %v4683_v62  ;;  %v2032_v41 = vpop.f32.mrb[14].mxu1  ;;  %2177 = vmatprep.mubr.bf16.mxu0 %v2122_v37 }
 0x3c4   :  { %v3203_v47 = vadd.f32 %v2032_v41, %v4679_v61  ;;  %v2034_v50 = vpop.f32.mrb[15].mxu1  ;;  %2178 = vmatmul.mubr.bf16.gmra.mrb[8].mxu0 %v2121_v34  ;;  %v2095_v49 = vmax.f32 %v3201_v10, 0.0 }
 0x3c5   :  { %v3204_v6 = vadd.f32 %v2034_v50, %v4683_v62  ;;  %v2096_v43 = vmax.f32 %v3202_v40, 0.0 }
 0x3c6   :  { %v2097_v42 = vmax.f32 %v3203_v47, 0.0 }
 0x3c7   :  { %v2098_v52 = vmax.f32 %v3204_v6, 0.0 }
 0x3c8   :  { %v2123_v44 = vpack.c.bf16 %v2097_v42, %v2095_v49 }
 0x3c9   :  { %v2124_v45 = vpack.c.bf16 %v2098_v52, %v2096_v43  ;;  %v2038_v63 = vpop.f32.mrb[16].mxu1 }
 0x3ca   :  { %v3205_v0 = vadd.f32 %v2038_v63, %v4679_v61  ;;  %v2040_v2 = vpop.f32.mrb[17].mxu1 }
 0x3cb   :  { %v3206_v4 = vadd.f32 %v2040_v2, %v4683_v62  ;;  %v2042_v5 = vpop.f32.mrb[18].mxu1  ;;  %2187 = vmatprep.mubr.bf16.mxu0 %v2124_v45 }
 0x3cc   :  { %v3207_v8 = vadd.f32 %v2042_v5, %v4679_v61  ;;  %v2044_v11 = vpop.f32.mrb[19].mxu1  ;;  %2188 = vmatmul.mubr.bf16.gmra.mrb[12].mxu0 %v2123_v44  ;;  %v2099_v13 = vmax.f32 %v3205_v0, 0.0 }
 0x3cd   :  { %v3208_v12 = vadd.f32 %v2044_v11, %v4683_v62  ;;  %v2100_v60 = vmax.f32 %v3206_v4, 0.0 }
 0x3ce   :  { %v2101_v14 = vmax.f32 %v3207_v8, 0.0 }
 0x3cf   :  { %v2102_v35 = vmax.f32 %v3208_v12, 0.0 }
 0x3d0   :  { %v2125_v36 = vpack.c.bf16 %v2101_v14, %v2099_v13 }
 0x3d1   :  { %v2126_v38 = vpack.c.bf16 %v2102_v35, %v2100_v60  ;;  %v2048_v7 = vpop.f32.mrb[20].mxu1  ;;  %v3659_v60 = vmov 0.0   ;;  %v2248_v35 = vld [vmem:[%s5645_s1] sm:$0xff] }
 0x3d2   :  { %v3209_v9 = vadd.f32 %v2048_v7, %v4679_v61  ;;  %v2050_v46 = vpop.f32.mrb[21].mxu1  ;;  %v2253_v7 = vld [vmem:[%s5645_s1 + $0x28] sm:$0xff] }
 0x3d3   :  { %v3210_v48 = vadd.f32 %v2050_v46, %v4683_v62  ;;  %v2052_v55 = vpop.f32.mrb[22].mxu1  ;;  %2197 = vmatprep.mubr.bf16.mxu0 %v2126_v38  ;;  %v2252_v38 = vld [vmem:[%s5645_s1 + $0x20] sm:$0xff]  ;;  %v2255_v46 = vld [vmem:[%s5645_s1 + $0x38] sm:$0xff] }
 0x3d4   :  { %v3211_v53 = vadd.f32 %v2052_v55, %v4679_v61  ;;  %v2054_v54 = vpop.f32.mrb[23].mxu1  ;;  %2198 = vmatmul.mubr.bf16.gmra.mrb[16].mxu0 %v2125_v36  ;;  %v2103_v59 = vmax.f32 %v3209_v9, 0.0  ;;  %v2251_v36 = vld [vmem:[%s5645_s1 + $0x18] sm:$0xff]  ;;  %v2254_v9 = vld [vmem:[%s5645_s1 + $0x30] sm:$0xff]  ;;  %v2257_v55 = vld [vmem:[%s5645_s1 + $0x48] sm:$0xff] }
 0x3d5   :  { %v3212_v56 = vadd.f32 %v2054_v54, %v4683_v62  ;;  %v2104_v16 = vmax.f32 %v3210_v48, 0.0  ;;  %v2256_v48 = vld [vmem:[%s5645_s1 + $0x40] sm:$0xff]  ;;  %v2259_v54 = vld [vmem:[%s5645_s1 + $0x58] sm:$0xff] }
 0x3d6   :  { %v2105_v15 = vmax.f32 %v3211_v53, 0.0  ;;  %v2258_v53 = vld [vmem:[%s5645_s1 + $0x50] sm:$0xff] }
 0x3d7   :  { %v2106_v17 = vmax.f32 %v3212_v56, 0.0  ;;  %v2260_v56 = vld [vmem:[%s5645_s1 + $0x60] sm:$0xff] }
 0x3d8   :  { %v2127_v18 = vpack.c.bf16 %v2105_v15, %v2103_v59  ;;  %v2261_v59 = vld [vmem:[%s5645_s1 + $0x68] sm:$0xff]  ;;  %v2262_v15 = vld [vmem:[%s5645_s1 + $0x70] sm:$0xff] }
 0x3d9   :  { %v2128_v20 = vpack.c.bf16 %v2106_v17, %v2104_v16  ;;  %v2058_v21 = vpop.f32.mrb[24].mxu1  ;;  %v2263_v16 = vld [vmem:[%s5645_s1 + $0x78] sm:$0xff] }
 0x3da   :  { %v3213_v22 = vadd.f32 %v2058_v21, %v4679_v61  ;;  %v2060_v23 = vpop.f32.mrb[25].mxu1 }
 0x3db   :  { %v3214_v24 = vadd.f32 %v2060_v23, %v4683_v62  ;;  %v2062_v25 = vpop.f32.mrb[26].mxu1  ;;  %2207 = vmatprep.mubr.bf16.mxu0 %v2128_v20 }
 0x3dc   :  { %v3215_v26 = vadd.f32 %v2062_v25, %v4679_v61  ;;  %v2064_v27 = vpop.f32.mrb[27].mxu1  ;;  %2208 = vmatmul.mubr.bf16.gmra.mrb[20].mxu0 %v2127_v18  ;;  %v2107_v29 = vmax.f32 %v3213_v22, 0.0 }
 0x3dd   :  { %v3216_v28 = vadd.f32 %v2064_v27, %v4683_v62  ;;  %v2108_v30 = vmax.f32 %v3214_v24, 0.0 }
 0x3de   :  { %v2109_v57 = vmax.f32 %v3215_v26, 0.0 }
 0x3df   :  { %v2110_v58 = vmax.f32 %v3216_v28, 0.0 }
 0x3e0   :  { %v2129_v1 = vpack.c.bf16 %v2109_v57, %v2107_v29 }
 0x3e1   :  { %v2130_v31 = vpack.c.bf16 %v2110_v58, %v2108_v30  ;;  %v2068_v32 = vpop.f32.mrb[28].mxu1 }
 0x3e2   :  { %v3217_v33 = vadd.f32 %v2068_v32, %v4679_v61  ;;  %v2070_v34 = vpop.f32.mrb[29].mxu1 }
 0x3e3   :  { %v3218_v37 = vadd.f32 %v2070_v34, %v4683_v62  ;;  %v2072_v39 = vpop.f32.mrb[30].mxu1  ;;  %2217 = vmatprep.mubr.bf16.mxu0 %v2130_v31 }
 0x3e4   :  { %v3219_v10 = vadd.f32 %v2072_v39, %v4679_v61  ;;  %v2074_v51 = vpop.f32.mrb[31].mxu1  ;;  %2218 = vmatmul.mubr.bf16.gmra.mrb[24].mxu0 %v2129_v1  ;;  %v2111_v41 = vmax.f32 %v3217_v33, 0.0 }
 0x3e5   :  { %v3220_v40 = vadd.f32 %v2074_v51, %v4683_v62  ;;  %v2112_v50 = vmax.f32 %v3218_v37, 0.0 }
 0x3e6   :  { %v2113_v47 = vmax.f32 %v3219_v10, 0.0 }
 0x3e7   :  { %v2114_v6 = vmax.f32 %v3220_v40, 0.0 }
 0x3e8   :  { %v2131_v49 = vpack.c.bf16 %v2113_v47, %v2111_v41 }
 0x3e9   :  { %v2132_v42 = vpack.c.bf16 %v2114_v6, %v2112_v50  ;;  %v2078_v43 = vpop.f32.mrb[32].mxu1 }
 0x3ea   :  { %v3221_v52 = vadd.f32 %v2078_v43, %v4679_v61  ;;  %v2080_v44 = vpop.f32.mrb[33].mxu1 }
 0x3eb   :  { %v3222_v45 = vadd.f32 %v2080_v44, %v4683_v62  ;;  %v2082_v63 = vpop.f32.mrb[34].mxu1  ;;  %2227 = vmatprep.mubr.bf16.mxu0 %v2132_v42 }
 0x3ec   :  { %v3223_v0 = vadd.f32 %v2082_v63, %v4679_v61  ;;  %v2084_v2 = vpop.f32.mrb[35].mxu1  ;;  %2228 = vmatmul.mubr.bf16.gmra.mrb[28].mxu0 %v2131_v49  ;;  %v2115_v5 = vmax.f32 %v3221_v52, 0.0  ;;  %v2249_v61 = vld [vmem:[%s5645_s1 + $0x8] sm:$0xff] }
 0x3ed   :  { %v3224_v4 = vadd.f32 %v2084_v2, %v4683_v62  ;;  %v2116_v11 = vmax.f32 %v3222_v45, 0.0  ;;  %v2250_v62 = vld [vmem:[%s5645_s1 + $0x10] sm:$0xff] }
 0x3ee   :  { %v2117_v8 = vmax.f32 %v3223_v0, 0.0 }
 0x3ef   :  { %v2118_v12 = vmax.f32 %v3224_v4, 0.0 }
 0x3f0   :  { %v2133_v13 = vpack.c.bf16 %v2117_v8, %v2115_v5 }
 0x3f1   :  { %v2134_v14 = vpack.c.bf16 %v2118_v12, %v2116_v11 }
 0x3f3   :  { %2237 = vmatprep.mubr.bf16.mxu0 %v2134_v14 }
 0x3f4   :  { %2238 = vmatmul.mubr.bf16.gmra.mrb[32].mxu0 %v2133_v13 }
 0x3f5   :  { %2377 = vmatprep.mubr.f32.mxu0 %v3659_v60 }
 0x3fc   :  { %3143 = vmatmul.mubr.msk.f32.vlgmr.msra.gmra.mrb[36].mxu0 %vm2264_vm0, %v2248_v35 }
 0x3fd   :  { %2383 = vmatprep.mubr.f32.mxu0 %v3659_v60 }
 0x400   :  { %3144 = vmatmul.mubr.msk.f32.gmra.mrb[38].mxu0 %vm2264_vm0, %v2249_v61 }
 0x401   :  { %2389 = vmatprep.mubr.f32.mxu0 %v3659_v60 }
 0x404   :  { %3145 = vmatmul.mubr.msk.f32.gmra.mrb[40].mxu0 %vm2264_vm0, %v2250_v62 }
 0x405   :  { %2395 = vmatprep.mubr.f32.mxu0 %v3659_v60 }
 0x408   :  { %3146 = vmatmul.mubr.msk.f32.gmra.mrb[42].mxu0 %vm2264_vm0, %v2251_v36 }
 0x409   :  { %2401 = vmatprep.mubr.f32.mxu0 %v3659_v60 }
 0x40c   :  { %3147 = vmatmul.mubr.msk.f32.gmra.mrb[44].mxu0 %vm2264_vm0, %v2252_v38 }
 0x40d   :  { %2407 = vmatprep.mubr.f32.mxu0 %v3659_v60 }
 0x410   :  { %3148 = vmatmul.mubr.msk.f32.gmra.mrb[46].mxu0 %vm2264_vm0, %v2253_v7 }
 0x411   :  { %2413 = vmatprep.mubr.f32.mxu0 %v3659_v60 }
 0x414   :  { %3149 = vmatmul.mubr.msk.f32.gmra.mrb[48].mxu0 %vm2264_vm0, %v2254_v9 }
 0x415   :  { %2419 = vmatprep.mubr.f32.mxu0 %v3659_v60 }
 0x418   :  { %3150 = vmatmul.mubr.msk.f32.gmra.mrb[50].mxu0 %vm2264_vm0, %v2255_v46 }
 0x419   :  { %2425 = vmatprep.mubr.f32.mxu0 %v3659_v60 }
 0x41c   :  { %3151 = vmatmul.mubr.msk.f32.gmra.mrb[52].mxu0 %vm2264_vm0, %v2256_v48 }
 0x41d   :  { %2431 = vmatprep.mubr.f32.mxu0 %v3659_v60 }
 0x420   :  { %3152 = vmatmul.mubr.msk.f32.gmra.mrb[54].mxu0 %vm2264_vm0, %v2257_v55 }
 0x421   :  { %2437 = vmatprep.mubr.f32.mxu0 %v3659_v60 }
 0x424   :  { %3153 = vmatmul.mubr.msk.f32.gmra.mrb[56].mxu0 %vm2264_vm0, %v2258_v53 }
 0x425   :  { %2443 = vmatprep.mubr.f32.mxu0 %v3659_v60 }
 0x428   :  { %3154 = vmatmul.mubr.msk.f32.gmra.mrb[58].mxu0 %vm2264_vm0, %v2259_v54 }
 0x429   :  { %2449 = vmatprep.mubr.f32.mxu0 %v3659_v60 }
 0x42c   :  { %3155 = vmatmul.mubr.msk.f32.gmra.mrb[60].mxu0 %vm2264_vm0, %v2260_v56 }
 0x42d   :  { %2455 = vmatprep.mubr.f32.mxu0 %v3659_v60 }
 0x430   :  { %3156 = vmatmul.mubr.msk.f32.gmra.mrb[62].mxu0 %vm2264_vm0, %v2261_v59 }
 0x431   :  { %2461 = vmatprep.mubr.f32.mxu0 %v3659_v60 }
 0x434   :  { %3157 = vmatmul.mubr.msk.f32.gmra.mrb[64].mxu0 %vm2264_vm0, %v2262_v15 }
 0x435   :  { %2467 = vmatprep.mubr.f32.mxu0 %v3659_v60 }
 0x438   :  { %3158 = vmatmul.mubr.msk.f32.gmra.mrb[66].mxu0 %vm2264_vm0, %v2263_v16 }
 0x48f   :  { %v5146_v17 = vpop.f32.mrb[4].mxu0 }
 0x490   :  { %v2171_v18 = vpop.f32.mrb[5].mxu0 }
 0x491   :  { %v5149_v20 = vadd.f32 %v2171_v18, %v4944_v3  ;;  %v5151_v21 = vpop.f32.mrb[6].mxu0 }
 0x492   :  { %v5153_v22 = vpop.f32.mrb[7].mxu0 }
 0x493   :  { %2794 = vmatprep.mubr.f32.mxu1 %v5149_v20 }
 0x497   :  { %v5156_v23 = vpop.f32.mrb[8].mxu0 }
 0x498   :  { %v5158_v24 = vpop.f32.mrb[9].mxu0 }
 0x499   :  { %v5160_v25 = vpop.f32.mrb[10].mxu0 }
 0x49a   :  { %v5162_v26 = vpop.f32.mrb[11].mxu0 }
 0x49f   :  { %v5164_v27 = vpop.f32.mrb[12].mxu0 }
 0x4a0   :  { %v5166_v28 = vpop.f32.mrb[13].mxu0 }
 0x4a1   :  { %v5168_v29 = vpop.f32.mrb[14].mxu0 }
 0x4a2   :  { %v5170_v57 = vpop.f32.mrb[15].mxu0 }
 0x4a7   :  { %v5172_v30 = vpop.f32.mrb[16].mxu0 }
 0x4a8   :  { %v5174_v58 = vpop.f32.mrb[17].mxu0 }
 0x4a9   :  { %v5176_v1 = vpop.f32.mrb[18].mxu0 }
 0x4aa   :  { %v5178_v31 = vpop.f32.mrb[19].mxu0 }
 0x4af   :  { %v5180_v32 = vpop.f32.mrb[20].mxu0 }
 0x4b0   :  { %v5182_v33 = vpop.f32.mrb[21].mxu0 }
 0x4b1   :  { %v5184_v34 = vpop.f32.mrb[22].mxu0 }
 0x4b2   :  { %v5186_v37 = vpop.f32.mrb[23].mxu0 }
 0x4b7   :  { %v5188_v39 = vpop.f32.mrb[24].mxu0 }
 0x4b8   :  { %v5190_v10 = vpop.f32.mrb[25].mxu0 }
 0x4b9   :  { %v5192_v51 = vpop.f32.mrb[26].mxu0 }
 0x4ba   :  { %v5194_v40 = vpop.f32.mrb[27].mxu0 }
 0x4bf   :  { %v5196_v41 = vpop.f32.mrb[28].mxu0 }
 0x4c0   :  { %v5198_v47 = vpop.f32.mrb[29].mxu0 }
 0x4c1   :  { %v5200_v50 = vpop.f32.mrb[30].mxu0 }
 0x4c2   :  { %v5202_v6 = vpop.f32.mrb[31].mxu0 }
 0x4c7   :  { %v5204_v49 = vpop.f32.mrb[32].mxu0 }
 0x4c8   :  { %v5206_v42 = vpop.f32.mrb[33].mxu0 }
 0x4c9   :  { %v5208_v43 = vpop.f32.mrb[34].mxu0 }
 0x4ca   :  { %v5210_v52 = vpop.f32.mrb[35].mxu0 }
 0x4cf   :  { %v5212_v44 = vpop.f32.mrb[36].mxu0 }
 0x4d0   :  { %v2554_v45 = vmul.f32 %v5212_v44, %v5212_v44  ;;  %v5216_v63 = vpop.f32.mrb[37].mxu0 }
 0x4d1   :  { %v2555_v0 = vmul.f32 %v5216_v63, %v5216_v63 }
 0x4d3   :  { %v5220_v2 = vpop.f32.mrb[38].mxu0  ;;  %v2586_v4 = vadd.f32 %v2555_v0, %v2554_v45 }
 0x4d4   :  { %v2556_v5 = vmul.f32 %v5220_v2, %v5220_v2  ;;  %v5224_v8 = vpop.f32.mrb[39].mxu0 }
 0x4d5   :  { %v2557_v11 = vmul.f32 %v5224_v8, %v5224_v8  ;;  %2587 = vadd.xlane.f32.xlu0 %v2586_v4 }
 0x4d7   :  { %v5228_v12 = vpop.f32.mrb[40].mxu0  ;;  %v2589_v13 = vadd.f32 %v2557_v11, %v2556_v5 }
 0x4d8   :  { %v2558_v14 = vmul.f32 %v5228_v12, %v5228_v12  ;;  %v5232_v60 = vpop.f32.mrb[41].mxu0 }
 0x4d9   :  { %v2559_v35 = vmul.f32 %v5232_v60, %v5232_v60  ;;  %2590 = vadd.xlane.f32.xlu0 %v2589_v13 }
 0x4db   :  { %v5236_v61 = vpop.f32.mrb[42].mxu0  ;;  %v2592_v62 = vadd.f32 %v2559_v35, %v2558_v14 }
 0x4dc   :  { %v2560_v36 = vmul.f32 %v5236_v61, %v5236_v61  ;;  %v5240_v38 = vpop.f32.mrb[43].mxu0 }
 0x4dd   :  { %v2561_v7 = vmul.f32 %v5240_v38, %v5240_v38  ;;  %2593 = vadd.xlane.f32.xlu1 %v2592_v62 }
 0x4df   :  { %v5244_v9 = vpop.f32.mrb[44].mxu0  ;;  %v2595_v46 = vadd.f32 %v2561_v7, %v2560_v36 }
 0x4e0   :  { %v2562_v48 = vmul.f32 %v5244_v9, %v5244_v9  ;;  %v5248_v55 = vpop.f32.mrb[45].mxu0 }
 0x4e1   :  { %v2563_v53 = vmul.f32 %v5248_v55, %v5248_v55  ;;  %2596 = vadd.xlane.f32.xlu1 %v2595_v46 }
 0x4e3   :  { %v5252_v54 = vpop.f32.mrb[46].mxu0  ;;  %v2598_v56 = vadd.f32 %v2563_v53, %v2562_v48 }
 0x4e4   :  { %v2564_v59 = vmul.f32 %v5252_v54, %v5252_v54  ;;  %v5256_v15 = vpop.f32.mrb[47].mxu0 }
 0x4e5   :  { %v2565_v16 = vmul.f32 %v5256_v15, %v5256_v15  ;;  %2599 = vadd.xlane.f32.xlu0 %v2598_v56 }
 0x4e7   :  { %v5260_v18 = vpop.f32.mrb[48].mxu0  ;;  %v2601_v45 = vadd.f32 %v2565_v16, %v2564_v59 }
 0x4e8   :  { %v2566_v0 = vmul.f32 %v5260_v18, %v5260_v18  ;;  %v5264_v4 = vpop.f32.mrb[49].mxu0 }
 0x4e9   :  { %v2567_v5 = vmul.f32 %v5264_v4, %v5264_v4  ;;  %2602 = vadd.xlane.f32.xlu1 %v2601_v45 }
 0x4eb   :  { %v5268_v11 = vpop.f32.mrb[50].mxu0  ;;  %v2604_v13 = vadd.f32 %v2567_v5, %v2566_v0 }
 0x4ec   :  { %v2568_v14 = vmul.f32 %v5268_v11, %v5268_v11  ;;  %v5272_v35 = vpop.f32.mrb[51].mxu0 }
 0x4ed   :  { %v2569_v62 = vmul.f32 %v5272_v35, %v5272_v35  ;;  %2605 = vadd.xlane.f32.xlu0 %v2604_v13 }
 0x4ef   :  { %v5276_v36 = vpop.f32.mrb[52].mxu0  ;;  %v2607_v7 = vadd.f32 %v2569_v62, %v2568_v14 }
 0x4f0   :  { %5908 = vst [vmem:[#allocation2_spill] sm:$0xff] %v5276_v36  ;;  %v2570_v46 = vmul.f32 %v5276_v36, %v5276_v36  ;;  %v5280_v48 = vpop.f32.mrb[53].mxu0 }
 0x4f1   :  { %v2571_v53 = vmul.f32 %v5280_v48, %v5280_v48  ;;  %2608 = vadd.xlane.f32.xlu1 %v2607_v7 }
 0x4f3   :  { %v5284_v56 = vpop.f32.mrb[54].mxu0  ;;  %v2610_v59 = vadd.f32 %v2571_v53, %v2570_v46 }
 0x4f4   :  { %5909 = vst [vmem:[#allocation3_spill] sm:$0xff] %v5284_v56  ;;  %v2572_v16 = vmul.f32 %v5284_v56, %v5284_v56  ;;  %v5288_v45 = vpop.f32.mrb[55].mxu0 }
 0x4f5   :  { %v2573_v0 = vmul.f32 %v5288_v45, %v5288_v45  ;;  %2611 = vadd.xlane.f32.xlu0 %v2610_v59 }
 0x4f7   :  { %v5292_v5 = vpop.f32.mrb[56].mxu0  ;;  %v2613_v13 = vadd.f32 %v2573_v0, %v2572_v16 }
 0x4f8   :  { %5910 = vst [vmem:[#allocation4_spill] sm:$0xff] %v5292_v5  ;;  %v2574_v14 = vmul.f32 %v5292_v5, %v5292_v5  ;;  %v5296_v62 = vpop.f32.mrb[57].mxu0 }
 0x4f9   :  { %5911 = vst [vmem:[#allocation5_spill] sm:$0xff] %v5296_v62  ;;  %v2575_v7 = vmul.f32 %v5296_v62, %v5296_v62  ;;  %2614 = vadd.xlane.f32.xlu1 %v2613_v13 }
 0x4fb   :  { %v5300_v46 = vpop.f32.mrb[58].mxu0  ;;  %v2616_v53 = vadd.f32 %v2575_v7, %v2574_v14 }
 0x4fc   :  { %5912 = vst [vmem:[#allocation6_spill] sm:$0xff] %v5300_v46  ;;  %v2576_v56 = vmul.f32 %v5300_v46, %v5300_v46  ;;  %v5304_v36 = vpop.f32.mrb[59].mxu0 }
 0x4fd   :  { %5913 = vst [vmem:[#allocation7_spill] sm:$0xff] %v5304_v36  ;;  %v2577_v59 = vmul.f32 %v5304_v36, %v5304_v36  ;;  %2617 = vadd.xlane.f32.xlu0 %v2616_v53  ;;  %v5326_v53 = vadd.f32 %v5146_v17, %v5050_v19 }
 0x4ff   :  { %v5308_v16 = vpop.f32.mrb[60].mxu0  ;;  %v2619_v0 = vadd.f32 %v2577_v59, %v2576_v56  ;;  %5916 = vst [vmem:[#allocation10_spill] sm:$0xff] %v5326_v53 }
 0x500   :  { %5914 = vst [vmem:[#allocation8_spill] sm:$0xff] %v5308_v16  ;;  %v2578_v5 = vmul.f32 %v5308_v16, %v5308_v16  ;;  %v5312_v62 = vpop.f32.mrb[61].mxu0 }
 0x501   :  { %v2579_v13 = vmul.f32 %v5312_v62, %v5312_v62  ;;  %2620 = vadd.xlane.f32.xlu1 %v2619_v0 }
 0x503   :  { %v5316_v14 = vpop.f32.mrb[62].mxu0  ;;  %v2622_v7 = vadd.f32 %v2579_v13, %v2578_v5  ;;  %v5336_v13 = vadd.f32 %v5151_v21, %v5050_v19  ;;  %v5354_v21 = vadd.f32 %v5158_v24, %v4944_v3 }
 0x504   :  { %5915 = vst [vmem:[#allocation9_spill] sm:$0xff] %v5316_v14  ;;  %v2580_v46 = vmul.f32 %v5316_v14, %v5316_v14  ;;  %v5320_v36 = vpop.f32.mrb[63].mxu0  ;;  %v5340_v14 = vadd.f32 %v5153_v22, %v4944_v3 }
 0x505   :  { %v2581_v56 = vmul.f32 %v5320_v36, %v5320_v36  ;;  %2623 = vadd.xlane.f32.xlu0 %v2622_v7  ;;  %5919 = vst [vmem:[#allocation13_spill] sm:$0xff] %v5336_v13  ;;  %v2475_v7 = vmul.f32 %v5149_v20, %v5149_v20  ;;  %5922 = vst [vmem:[#allocation16_spill] sm:$0xff] %v5354_v21 }
 0x506   :  { %5920 = vst [vmem:[#allocation14_spill] sm:$0xff] %v5340_v14  ;;  %v2477_v20 = vmul.f32 %v5340_v14, %v5340_v14  ;;  %v5382_v14 = vadd.f32 %v5164_v27, %v5050_v19  ;;  %v5400_v27 = vadd.f32 %v5172_v30, %v5050_v19 }
 0x507   :  { %v5328_v59 = vpop.f32.mrb[64].mxu0  ;;  %v2625_v16 = vadd.f32 %v2581_v56, %v2580_v46  ;;  %v2474_v46 = vmul.f32 %v5326_v53, %v5326_v53  ;;  %v5350_v56 = vadd.f32 %v5156_v23, %v5050_v19  ;;  %v2476_v53 = vmul.f32 %v5336_v13, %v5336_v13 }
 0x508   :  { %5917 = vst [vmem:[#allocation11_spill] sm:$0xff] %v5328_v59  ;;  %v2582_v0 = vmul.f32 %v5328_v59, %v5328_v59  ;;  %v5332_v5 = vpop.f32.mrb[65].mxu0  ;;  %v5378_v13 = vadd.f32 %v5162_v26, %v4944_v3  ;;  %5924 = vst [vmem:[#allocation18_spill] sm:$0xff] %v5400_v27 }
 0x509   :  { %5918 = vst [vmem:[#allocation12_spill] sm:$0xff] %v5332_v5  ;;  %v2583_v17 = vmul.f32 %v5332_v5, %v5332_v5  ;;  %2626 = vadd.xlane.f32.xlu1 %v2625_v16  ;;  %5921 = vst [vmem:[#allocation15_spill] sm:$0xff] %v5350_v56  ;;  %v2478_v24 = vmul.f32 %v5350_v56, %v5350_v56 }
 0x50b   :  { %v5356_v22 = vpop.f32.mrb[66].mxu0  ;;  %v2628_v59 = vadd.f32 %v2583_v17, %v2582_v0  ;;  %v2479_v0 = vmul.f32 %v5354_v21, %v5354_v21  ;;  %v5374_v17 = vadd.f32 %v5160_v25, %v5050_v19  ;;  %v5390_v21 = vadd.f32 %v5168_v29, %v5050_v19 }
 0x50c   :  { %5923 = vst [vmem:[#allocation17_spill] sm:$0xff] %v5356_v22  ;;  %v2584_v16 = vmul.f32 %v5356_v22, %v5356_v22  ;;  %v5360_v5 = vpop.f32.mrb[67].mxu0  ;;  %v2506_v22 = vadd.f32 %v2475_v7, %v2474_v46  ;;  %v5394_v25 = vadd.f32 %v5170_v57, %v4944_v3  ;;  %v2509_v46 = vadd.f32 %v2477_v20, %v2476_v53 }
 0x50d   :  { %v2585_v23 = vmul.f32 %v5360_v5, %v5360_v5  ;;  %2629 = vadd.xlane.f32.xlu0 %v2628_v59  ;;  %v5386_v59 = vadd.f32 %v5166_v28, %v4944_v3  ;;  %v2480_v26 = vmul.f32 %v5374_v17, %v5374_v17  ;;  %v5404_v28 = vadd.f32 %v5174_v58, %v4944_v3 }
 0x50e   :  { %v2481_v29 = vmul.f32 %v5378_v13, %v5378_v13  ;;  %v2482_v57 = vmul.f32 %v5382_v14, %v5382_v14  ;;  %v2485_v30 = vmul.f32 %v5394_v25, %v5394_v25  ;;  %v5418_v58 = vadd.f32 %v5176_v1, %v5050_v19 }
 0x50f   :  { %v2631_v56 = vadd.f32 %v2585_v23, %v2584_v16  ;;  %v2483_v7 = vmul.f32 %v5386_v59, %v5386_v59  ;;  %v2486_v53 = vmul.f32 %v5400_v27, %v5400_v27  ;;  %v2487_v16 = vmul.f32 %v5404_v28, %v5404_v28 }
 0x510   :  { %v5426_v20 = vadd.f32 %v5178_v31, %v4944_v3  ;;  %v5430_v23 = vadd.f32 %v5180_v32, %v5050_v19  ;;  %v5434_v1 = vadd.f32 %v5182_v33, %v4944_v3  ;;  %v5444_v32 = vadd.f32 %v5184_v34, %v5050_v19 }
 0x511   :  { %2507 = vadd.xlane.f32.xlu0 %v2506_v22  ;;  %2632 = vadd.xlane.f32.xlu1 %v2631_v56  ;;  %v2512_v56 = vadd.f32 %v2479_v0, %v2478_v24  ;;  %v2484_v22 = vmul.f32 %v5390_v21, %v5390_v21  ;;  %v2518_v24 = vadd.f32 %v2483_v7, %v2482_v57 }
 0x512   :  { %v2515_v0 = vadd.f32 %v2481_v29, %v2480_v26  ;;  %v2489_v31 = vmul.f32 %v5426_v20, %v5426_v20  ;;  %v2490_v27 = vmul.f32 %v5430_v23, %v5430_v23  ;;  %v2524_v33 = vadd.f32 %v2487_v16, %v2486_v53 }
 0x513   :  { %v2491_v26 = vmul.f32 %v5434_v1, %v5434_v1  ;;  %v5450_v29 = vadd.f32 %v5186_v37, %v4944_v3  ;;  %v5454_v57 = vadd.f32 %v5188_v39, %v5050_v19  ;;  %v5458_v7 = vadd.f32 %v5190_v10, %v4944_v3 }
 0x514   :  { %v5462_v34 = vadd.f32 %v5192_v51, %v5050_v19  ;;  %v2492_v37 = vmul.f32 %v5444_v32, %v5444_v32  ;;  %v5472_v39 = vadd.f32 %v5196_v41, %v5050_v19  ;;  %v5476_v10 = vadd.f32 %v5198_v47, %v4944_v3 }
 0x515   :  { %2513 = vadd.xlane.f32.xlu0 %v2512_v56  ;;  %2510 = vadd.xlane.f32.xlu1 %v2509_v46  ;;  %v2488_v46 = vmul.f32 %v5418_v58, %v5418_v58  ;;  %v2521_v56 = vadd.f32 %v2485_v30, %v2484_v22  ;;  %v5466_v22 = vadd.f32 %v5194_v40, %v4944_v3 }
 0x516   :  { %5925 = vst [vmem:[#allocation19_spill] sm:$0xff] %v5472_v39  ;;  %v2493_v51 = vmul.f32 %v5450_v29, %v5450_v29  ;;  %v2494_v40 = vmul.f32 %v5454_v57, %v5454_v57  ;;  %v2495_v53 = vmul.f32 %v5458_v7, %v5458_v7  ;;  %v2530_v16 = vadd.f32 %v2491_v26, %v2490_v27 }
 0x517   :  { %v2527_v30 = vadd.f32 %v2489_v31, %v2488_v46  ;;  %v2497_v41 = vmul.f32 %v5466_v22, %v5466_v22  ;;  %v2498_v47 = vmul.f32 %v5472_v39, %v5472_v39  ;;  %v5494_v46 = vadd.f32 %v5200_v50, %v5050_v19 }
 0x518   :  { %v5498_v27 = vadd.f32 %v5202_v6, %v4944_v3  ;;  %v5506_v31 = vadd.f32 %v5206_v42, %v4944_v3  ;;  %v2533_v26 = vadd.f32 %v2493_v51, %v2492_v37  ;;  %v5518_v42 = vadd.f32 %v5208_v43, %v5050_v19 }
 0x519   :  { %2519 = vadd.xlane.f32.xlu0 %v2518_v24  ;;  %2516 = vadd.xlane.f32.xlu1 %v2515_v0  ;;  %v2496_v24 = vmul.f32 %v5462_v34, %v5462_v34  ;;  %v2499_v0 = vmul.f32 %v5476_v10, %v5476_v10  ;;  %v2500_v50 = vmul.f32 %v5494_v46, %v5494_v46 }
 0x51a   :  { %v2503_v39 = vmul.f32 %v5506_v31, %v5506_v31  ;;  %v5522_v37 = vadd.f32 %v5210_v52, %v4944_v3  ;;  %v2504_v51 = vmul.f32 %v5518_v42, %v5518_v42 }
 0x51b   :  { %v2542_v6 = vadd.f32 %v2499_v0, %v2498_v47 }
 0x51d   :  { %2525 = vadd.xlane.f32.xlu0 %v2524_v33  ;;  %2522 = vadd.xlane.f32.xlu1 %v2521_v56  ;;  %v5502_v56 = vadd.f32 %v5204_v49, %v5050_v19  ;;  %v2536_v33 = vadd.f32 %v2495_v53, %v2494_v40  ;;  %v2505_v40 = vmul.f32 %v5522_v37, %v5522_v37 }
 0x51f   :  { %v2502_v49 = vmul.f32 %v5502_v56, %v5502_v56 }
 0x521   :  { %2531 = vadd.xlane.f32.xlu0 %v2530_v16  ;;  %2528 = vadd.xlane.f32.xlu1 %v2527_v30  ;;  %v2501_v30 = vmul.f32 %v5498_v27, %v5498_v27  ;;  %v2539_v16 = vadd.f32 %v2497_v41, %v2496_v24  ;;  %v2548_v53 = vadd.f32 %v2503_v39, %v2502_v49 }
 0x522   :  { %v2551_v41 = vadd.f32 %v2505_v40, %v2504_v51 }
 0x523   :  { %v2545_v24 = vadd.f32 %v2501_v30, %v2500_v50 }
 0x525   :  { %2537 = vadd.xlane.f32.xlu0 %v2536_v33  ;;  %2534 = vadd.xlane.f32.xlu1 %v2533_v26 }
 0x529   :  { %2543 = vadd.xlane.f32.xlu0 %v2542_v6  ;;  %2540 = vadd.xlane.f32.xlu1 %v2539_v16 }
 0x52d   :  { %2549 = vadd.xlane.f32.xlu0 %v2548_v53  ;;  %2546 = vadd.xlane.f32.xlu1 %v2545_v24 }
 0x531   :  { %2552 = vadd.xlane.f32.xlu1 %v2551_v41 }
 0x562   :  { %v2588_v19 = vpop.xlane.xlu0 %2587 }
 0x563   :  { %v2666_v43 = vmax.f32 %v2588_v19, 1e-12 }
 0x565   :  { %3582 = vrsqrt.f32 %v2666_v43 }
 0x566   :  { %v2591_v47 = vpop.xlane.xlu0 %2590 }
 0x567   :  { %v2667_v3 = vmax.f32 %v2591_v47, 1e-12 }
 0x569   :  { %3584 = vrsqrt.f32 %v2667_v3 }
 0x56a   :  { %v2594_v52 = vpop.xlane.xlu1 %2593 }
 0x56b   :  { %v2668_v0 = vmax.f32 %v2594_v52, 1e-12 }
 0x56d   :  { %3586 = vrsqrt.f32 %v2668_v0 }
 0x56e   :  { %v2597_v33 = vpop.xlane.xlu1 %2596 }
 0x56f   :  { %v2669_v26 = vmax.f32 %v2597_v33, 1e-12  ;;  %v3583_v6 = vpop.eup %3582 }
 0x570   :  { %v2699_v30 = vmul.f32 %v3583_v6, %v5216_v63  ;;  %v2698_v51 = vmul.f32 %v3583_v6, %v5212_v44 }
 0x571   :  { %3588 = vrsqrt.f32 %v2669_v26 }
 0x572   :  { %v2600_v16 = vpop.xlane.xlu0 %2599 }
 0x573   :  { %v3585_v39 = vpop.eup %3584  ;;  %v2670_v50 = vmax.f32 %v2600_v16, 1e-12 }
 0x574   :  { %v2701_v49 = vmul.f32 %v3585_v39, %v5224_v8  ;;  %v2700_v40 = vmul.f32 %v3585_v39, %v5220_v2 }
 0x575   :  { %3590 = vrsqrt.f32 %v2670_v50 }
 0x576   :  { %v2603_v53 = vpop.xlane.xlu1 %2602  ;;  %v3159_v24 = vpack.c.bf16 %v2701_v49, %v2699_v30  ;;  %v3161_v41 = vpack.c.bf16 %v2700_v40, %v2698_v51 }
 0x577   :  { %v2671_v19 = vmax.f32 %v2603_v53, 1e-12  ;;  %v3587_v43 = vpop.eup %3586 }
 0x578   :  { %3160 = vmatprep.subr.bf16.mxu1 %v3159_v24  ;;  %v2703_v63 = vmul.f32 %v3587_v43, %v5232_v60  ;;  %v2702_v44 = vmul.f32 %v3587_v43, %v5228_v12 }
 0x579   :  { %3592 = vrsqrt.f32 %v2671_v19  ;;  %3162 = vmatpush1.bf16.xpose.msra.mxu1 %v3161_v41 }
 0x57a   :  { %v2606_v47 = vpop.xlane.xlu0 %2605 }
 0x57b   :  { %v3589_v3 = vpop.eup %3588  ;;  %v2672_v52 = vmax.f32 %v2606_v47, 1e-12 }
 0x57c   :  { %v2705_v8 = vmul.f32 %v3589_v3, %v5240_v38  ;;  %v2704_v2 = vmul.f32 %v3589_v3, %v5236_v61 }
 0x57d   :  { %3594 = vrsqrt.f32 %v2672_v52 }
 0x57e   :  { %v2609_v0 = vpop.xlane.xlu1 %2608  ;;  %v3163_v33 = vpack.c.bf16 %v2705_v8, %v2703_v63  ;;  %v3165_v26 = vpack.c.bf16 %v2704_v2, %v2702_v44 }
 0x57f   :  { %v2673_v6 = vmax.f32 %v2609_v0, 1e-12  ;;  %v3591_v16 = vpop.eup %3590 }
 0x580   :  { %3164 = vmatprep.subr.bf16.mxu1 %v3163_v33  ;;  %v2707_v60 = vmul.f32 %v3591_v16, %v5248_v55  ;;  %v2706_v12 = vmul.f32 %v3591_v16, %v5244_v9  ;;  %v5926_v33 = vld [vmem:[#allocation2_spill] sm:$0xff] }
 0x581   :  { %3596 = vrsqrt.f32 %v2673_v6  ;;  %3166 = vmatpush1.bf16.xpose.msra.mxu1 %v3165_v26  ;;  %v5927_v26 = vld [vmem:[#allocation3_spill] sm:$0xff] }
 0x582   :  { %v2612_v39 = vpop.xlane.xlu0 %2611 }
 0x583   :  { %v3593_v50 = vpop.eup %3592  ;;  %v2674_v30 = vmax.f32 %v2612_v39, 1e-12 }
 0x584   :  { %v2709_v38 = vmul.f32 %v3593_v50, %v5256_v15  ;;  %v2708_v61 = vmul.f32 %v3593_v50, %v5252_v54 }
 0x585   :  { %3598 = vrsqrt.f32 %v2674_v30 }
 0x586   :  { %v2615_v49 = vpop.xlane.xlu1 %2614  ;;  %v3167_v51 = vpack.c.bf16 %v2709_v38, %v2707_v60  ;;  %v3169_v40 = vpack.c.bf16 %v2708_v61, %v2706_v12  ;;  %v5928_v12 = vld [vmem:[#allocation5_spill] sm:$0xff] }
 0x587   :  { %v2675_v53 = vmax.f32 %v2615_v49, 1e-12  ;;  %v3595_v24 = vpop.eup %3594  ;;  %v5929_v49 = vld [vmem:[#allocation7_spill] sm:$0xff] }
 0x588   :  { %3168 = vmatprep.subr.bf16.mxu1 %v3167_v51  ;;  %v2711_v55 = vmul.f32 %v3595_v24, %v5264_v4  ;;  %v2710_v9 = vmul.f32 %v3595_v24, %v5260_v18  ;;  %v5930_v51 = vld [vmem:[#allocation4_spill] sm:$0xff] }
 0x589   :  { %3600 = vrsqrt.f32 %v2675_v53  ;;  %3170 = vmatpush1.bf16.xpose.msra.mxu1 %v3169_v40  ;;  %v5931_v53 = vld [vmem:[#allocation6_spill] sm:$0xff] }
 0x58a   :  { %v2618_v41 = vpop.xlane.xlu0 %2617 }
 0x58b   :  { %v3597_v19 = vpop.eup %3596  ;;  %v2676_v43 = vmax.f32 %v2618_v41, 1e-12 }
 0x58c   :  { %v2713_v15 = vmul.f32 %v3597_v19, %v5272_v35  ;;  %v2712_v54 = vmul.f32 %v3597_v19, %v5268_v11 }
 0x58d   :  { %3602 = vrsqrt.f32 %v2676_v43 }
 0x58e   :  { %v2621_v47 = vpop.xlane.xlu1 %2620  ;;  %v3171_v3 = vpack.c.bf16 %v2713_v15, %v2711_v55  ;;  %v3173_v52 = vpack.c.bf16 %v2712_v54, %v2710_v9 }
 0x58f   :  { %v2677_v63 = vmax.f32 %v2621_v47, 1e-12  ;;  %v3599_v8 = vpop.eup %3598 }
 0x590   :  { %3172 = vmatprep.subr.bf16.mxu1 %v3171_v3  ;;  %v2715_v4 = vmul.f32 %v3599_v8, %v5280_v48  ;;  %v2714_v18 = vmul.f32 %v3599_v8, %v5926_v33  ;;  %v5932_v3 = vld [vmem:[#allocation8_spill] sm:$0xff] }
 0x591   :  { %3604 = vrsqrt.f32 %v2677_v63  ;;  %3174 = vmatpush1.bf16.xpose.msra.mxu1 %v3173_v52  ;;  %v5933_v63 = vld [vmem:[#allocation9_spill] sm:$0xff] }
 0x592   :  { %v2624_v44 = vpop.xlane.xlu0 %2623 }
 0x593   :  { %v3601_v2 = vpop.eup %3600  ;;  %v2678_v0 = vmax.f32 %v2624_v44, 1e-12 }
 0x594   :  { %v2717_v35 = vmul.f32 %v3601_v2, %v5288_v45  ;;  %v2716_v11 = vmul.f32 %v3601_v2, %v5927_v26  ;;  %v5935_v26 = vld [vmem:[#allocation11_spill] sm:$0xff] }
 0x595   :  { %3606 = vrsqrt.f32 %v2678_v0 }
 0x596   :  { %v2627_v6 = vpop.xlane.xlu1 %2626  ;;  %v3175_v16 = vpack.c.bf16 %v2717_v35, %v2715_v4  ;;  %v3177_v39 = vpack.c.bf16 %v2716_v11, %v2714_v18  ;;  %v5934_v35 = vld [vmem:[#allocation12_spill] sm:$0xff] }
 0x597   :  { %v2679_v50 = vmax.f32 %v2627_v6, 1e-12  ;;  %v3603_v30 = vpop.eup %3602  ;;  %v5936_v6 = vld [vmem:[#allocation17_spill] sm:$0xff] }
 0x598   :  { %3176 = vmatprep.subr.bf16.mxu1 %v3175_v16  ;;  %v2719_v61 = vmul.f32 %v3603_v30, %v5928_v12  ;;  %v2718_v40 = vmul.f32 %v3603_v30, %v5930_v51  ;;  %v5939_v30 = vld [vmem:[#allocation13_spill] sm:$0xff] }
 0x599   :  { %3608 = vrsqrt.f32 %v2679_v50  ;;  %3178 = vmatpush1.bf16.xpose.msra.mxu1 %v3177_v39  ;;  %v5937_v39 = vld [vmem:[#allocation10_spill] sm:$0xff] }
 0x59a   :  { %v2630_v60 = vpop.xlane.xlu0 %2629  ;;  %v5938_v50 = vld [vmem:[#allocation14_spill] sm:$0xff] }
 0x59b   :  { %v3605_v38 = vpop.eup %3604  ;;  %v2680_v48 = vmax.f32 %v2630_v60, 1e-12  ;;  %v5940_v60 = vld [vmem:[#allocation16_spill] sm:$0xff] }
 0x59c   :  { %v2721_v45 = vmul.f32 %v3605_v38, %v5929_v49  ;;  %v2720_v24 = vmul.f32 %v3605_v38, %v5931_v53  ;;  %v5941_v38 = vld [vmem:[#allocation15_spill] sm:$0xff] }
 0x59d   :  { %3610 = vrsqrt.f32 %v2680_v48 }
 0x59e   :  { %v2633_v41 = vpop.xlane.xlu1 %2632  ;;  %v3179_v19 = vpack.c.bf16 %v2721_v45, %v2719_v61  ;;  %v3181_v43 = vpack.c.bf16 %v2720_v24, %v2718_v40 }
 0x59f   :  { %v2681_v55 = vmax.f32 %v2633_v41, 1e-12  ;;  %v3607_v15 = vpop.eup %3606 }
 0x5a0   :  { %3180 = vmatprep.subr.bf16.mxu1 %v3179_v19  ;;  %v2723_v54 = vmul.f32 %v3607_v15, %v5312_v62  ;;  %v2722_v52 = vmul.f32 %v3607_v15, %v5932_v3 }
 0x5a1   :  { %3182 = vmatpush1.bf16.xpose.msra.mxu1 %v3181_v43  ;;  %3612 = vrsqrt.f32 %v2681_v55 }
 0x5a3   :  { %v3609_v9 = vpop.eup %3608 }
 0x5a4   :  { %v2725_v47 = vmul.f32 %v3609_v9, %v5320_v36  ;;  %v2724_v8 = vmul.f32 %v3609_v9, %v5933_v63 }
 0x5a6   :  { %v3183_v44 = vpack.c.bf16 %v2725_v47, %v2723_v54  ;;  %v3185_v2 = vpack.c.bf16 %v2724_v8, %v2722_v52 }
 0x5a7   :  { %v3611_v0 = vpop.eup %3610 }
 0x5a8   :  { %3184 = vmatprep.subr.bf16.mxu1 %v3183_v44  ;;  %v2727_v33 = vmul.f32 %v3611_v0, %v5934_v35  ;;  %v2726_v11 = vmul.f32 %v3611_v0, %v5935_v26 }
 0x5a9   :  { %3186 = vmatpush1.bf16.xpose.msra.mxu1 %v3185_v2 }
 0x5ab   :  { %v3613_v4 = vpop.eup %3612 }
 0x5ac   :  { %v2729_v18 = vmul.f32 %v3613_v4, %v5360_v5  ;;  %v2728_v62 = vmul.f32 %v3613_v4, %v5936_v6  ;;  %v5942_v5 = vld [vmem:[#allocation18_spill] sm:$0xff] }
 0x5ae   :  { %v3187_v16 = vpack.c.bf16 %v2729_v18, %v2727_v33  ;;  %v3189_v36 = vpack.c.bf16 %v2728_v62, %v2726_v11 }
 0x5b0   :  { %3188 = vmatprep.subr.bf16.mxu1 %v3187_v16 }
 0x5b1   :  { %3190 = vmatpush1.bf16.xpose.msra.mxu1 %v3189_v36 }
 0x5b8   :  { %2795 = vmatmul.mubr.f32.vlgmr.msra.gmra.mrb[36].mxu1 %v5937_v39 }
 0x5b9   :  { %2799 = vmatprep.mubr.f32.mxu1 %v5938_v50 }
 0x5bc   :  { %2800 = vmatmul.mubr.f32.gmra.mrb[38].mxu1 %v5939_v30 }
 0x5bd   :  { %2804 = vmatprep.mubr.f32.mxu1 %v5940_v60 }
 0x5c0   :  { %2805 = vmatmul.mubr.f32.gmra.mrb[40].mxu1 %v5941_v38 }
 0x5c1   :  { %2809 = vmatprep.mubr.f32.mxu1 %v5378_v13  ;;  %v2508_v13 = vpop.xlane.xlu0 %2507 }
 0x5c4   :  { %2810 = vmatmul.mubr.f32.gmra.mrb[42].mxu1 %v5374_v17  ;;  %v2511_v17 = vpop.xlane.xlu1 %2510 }
 0x5c5   :  { %2814 = vmatprep.mubr.f32.mxu1 %v5386_v59  ;;  %v2635_v59 = vmax.f32 %v2511_v17, 1e-12 }
 0x5c8   :  { %2815 = vmatmul.mubr.f32.gmra.mrb[44].mxu1 %v5382_v14  ;;  %v5943_v14 = vld [vmem:[#allocation19_spill] sm:$0xff] }
 0x5c9   :  { %2819 = vmatprep.mubr.f32.mxu1 %v5394_v25  ;;  %v2514_v25 = vpop.xlane.xlu0 %2513 }
 0x5cc   :  { %2820 = vmatmul.mubr.f32.gmra.mrb[46].mxu1 %v5390_v21  ;;  %v2634_v21 = vmax.f32 %v2508_v13, 1e-12 }
 0x5cd   :  { %2824 = vmatprep.mubr.f32.mxu1 %v5404_v28  ;;  %v2636_v28 = vmax.f32 %v2514_v25, 1e-12 }
 0x5ce   :  { %3614 = vrsqrt.f32 %v2634_v21 }
 0x5cf   :  { %3616 = vrsqrt.f32 %v2635_v59 }
 0x5d0   :  { %2825 = vmatmul.mubr.f32.gmra.mrb[48].mxu1 %v5942_v5  ;;  %3618 = vrsqrt.f32 %v2636_v28 }
 0x5d1   :  { %2829 = vmatprep.mubr.f32.mxu1 %v5426_v20 }
 0x5d4   :  { %2830 = vmatmul.mubr.f32.gmra.mrb[50].mxu1 %v5418_v58  ;;  %v2517_v58 = vpop.xlane.xlu1 %2516 }
 0x5d5   :  { %2834 = vmatprep.mubr.f32.mxu1 %v5434_v1  ;;  %v2637_v20 = vmax.f32 %v2517_v58, 1e-12 }
 0x5d7   :  { %3620 = vrsqrt.f32 %v2637_v20 }
 0x5d8   :  { %2835 = vmatmul.mubr.f32.gmra.mrb[52].mxu1 %v5430_v23  ;;  %v2520_v23 = vpop.xlane.xlu0 %2519  ;;  %v3615_v1 = vpop.eup %3614 }
 0x5d9   :  { %2839 = vmatprep.mubr.f32.mxu1 %v5450_v29 }
 0x5dc   :  { %2840 = vmatmul.mubr.f32.gmra.mrb[54].mxu1 %v5444_v32 }
 0x5dd   :  { %2844 = vmatprep.mubr.f32.mxu1 %v5458_v7  ;;  %v2638_v7 = vmax.f32 %v2520_v23, 1e-12 }
 0x5df   :  { %3622 = vrsqrt.f32 %v2638_v7 }
 0x5e0   :  { %2845 = vmatmul.mubr.f32.gmra.mrb[56].mxu1 %v5454_v57 }
 0x5e1   :  { %2849 = vmatprep.mubr.f32.mxu1 %v5466_v22  ;;  %v3617_v22 = vpop.eup %3616 }
 0x5e4   :  { %2850 = vmatmul.mubr.f32.gmra.mrb[58].mxu1 %v5462_v34  ;;  %v2523_v34 = vpop.xlane.xlu1 %2522 }
 0x5e5   :  { %2854 = vmatprep.mubr.f32.mxu1 %v5476_v10 }
 0x5e8   :  { %2855 = vmatmul.mubr.f32.gmra.mrb[60].mxu1 %v5943_v14  ;;  %v2529_v49 = vpop.xlane.xlu1 %2528 }
 0x5e9   :  { %2859 = vmatprep.mubr.f32.mxu1 %v5498_v27  ;;  %v2641_v24 = vmax.f32 %v2529_v49, 1e-12 }
 0x5ec   :  { %2860 = vmatmul.mubr.f32.gmra.mrb[62].mxu1 %v5494_v46  ;;  %v2535_v54 = vpop.xlane.xlu1 %2534 }
 0x5ed   :  { %2864 = vmatprep.mubr.f32.mxu1 %v5506_v31  ;;  %v2526_v31 = vpop.xlane.xlu0 %2525  ;;  %v2643_v8 = vmax.f32 %v2535_v54, 1e-12 }
 0x5ee   :  { %v2640_v48 = vmax.f32 %v2526_v31, 1e-12 }
 0x5f0   :  { %2865 = vmatmul.mubr.f32.gmra.mrb[64].mxu1 %v5502_v56  ;;  %v2639_v56 = vmax.f32 %v2523_v34, 1e-12  ;;  %v2541_v18 = vpop.xlane.xlu1 %2540 }
 0x5f1   :  { %2869 = vmatprep.mubr.f32.mxu1 %v5522_v37  ;;  %v2532_v41 = vpop.xlane.xlu0 %2531  ;;  %v2645_v16 = vmax.f32 %v2541_v18, 1e-12 }
 0x5f2   :  { %3624 = vrsqrt.f32 %v2639_v56  ;;  %v2642_v9 = vmax.f32 %v2532_v41, 1e-12 }
 0x5f3   :  { %3626 = vrsqrt.f32 %v2640_v48 }
 0x5f4   :  { %2870 = vmatmul.mubr.f32.gmra.mrb[66].mxu1 %v5518_v42  ;;  %v3619_v42 = vpop.eup %3618  ;;  %3628 = vrsqrt.f32 %v2641_v24  ;;  %v2547_v5 = vpop.xlane.xlu1 %2546 }
 0x5f5   :  { %v3621_v45 = vpop.eup %3620  ;;  %3630 = vrsqrt.f32 %v2642_v9  ;;  %v2538_v44 = vpop.xlane.xlu0 %2537  ;;  %v2647_v59 = vmax.f32 %v2547_v5, 1e-12 }
 0x5f6   :  { %v3623_v19 = vpop.eup %3622  ;;  %v2644_v33 = vmax.f32 %v2538_v44, 1e-12  ;;  %3632 = vrsqrt.f32 %v2643_v8 }
 0x5f8   :  { %3634 = vrsqrt.f32 %v2644_v33 }
 0x5f9   :  { %v2544_v36 = vpop.xlane.xlu0 %2543  ;;  %3636 = vrsqrt.f32 %v2645_v16 }
 0x5fa   :  { %v2646_v38 = vmax.f32 %v2544_v36, 1e-12 }
 0x5fc   :  { %v3625_v47 = vpop.eup %3624  ;;  %3638 = vrsqrt.f32 %v2646_v38 }
 0x5fd   :  { %v3627_v2 = vpop.eup %3626  ;;  %v2550_v25 = vpop.xlane.xlu0 %2549  ;;  %3640 = vrsqrt.f32 %v2647_v59 }
 0x5fe   :  { %v3629_v26 = vpop.eup %3628 }
 0x5ff   :  { %v3631_v39 = vpop.eup %3630 }
 0x600   :  { %v3633_v14 = vpop.eup %3632 }
 0x602   :  { %v3635_v28 = vpop.eup %3634 }
 0x68b   :  { %v2796_v32 = vpop.f32.mrb[36].mxu1 }
 0x68c   :  { %v2875_v29 = vmul.f32 %v3615_v1, %v2796_v32  ;;  %v2798_v57 = vpop.f32.mrb[37].mxu1  ;;  %v2648_v1 = vmax.f32 %v2550_v25, 1e-12  ;;  %v2553_v32 = vpop.xlane.xlu1 %2552 }
 0x68e   :  { %2891 = vst [vmem:[%s5646_s7] sm:$0xff] %v2875_v29  ;;  %v3637_v29 = vpop.eup %3636  ;;  %3642 = vrsqrt.f32 %v2648_v1 }
 0x68f   :  { %v2801_v10 = vpop.f32.mrb[38].mxu1 }
 0x690   :  { %v2876_v46 = vmul.f32 %v3617_v22, %v2801_v10  ;;  %v2803_v27 = vpop.f32.mrb[39].mxu1  ;;  %v2649_v22 = vmax.f32 %v2553_v32, 1e-12  ;;  %v3639_v10 = vpop.eup %3638 }
 0x691   :  { %v3641_v31 = vpop.eup %3640 }
 0x692   :  { %2892 = vst [vmem:[%s5646_s7 + $0x8] sm:$0xff] %v2876_v46  ;;  %3644 = vrsqrt.f32 %v2649_v22 }
 0x693   :  { %v2806_v37 = vpop.f32.mrb[40].mxu1 }
 0x694   :  { %v2877_v12 = vmul.f32 %v3619_v42, %v2806_v37  ;;  %v2808_v61 = vpop.f32.mrb[41].mxu1 }
 0x696   :  { %2893 = vst [vmem:[%s5646_s7 + $0x10] sm:$0xff] %v2877_v12 }
 0x697   :  { %v2811_v51 = vpop.f32.mrb[42].mxu1 }
 0x698   :  { %v2878_v40 = vmul.f32 %v3621_v45, %v2811_v51  ;;  %v2813_v53 = vpop.f32.mrb[43].mxu1  ;;  %v3643_v61 = vpop.eup %3642 }
 0x69a   :  { %2894 = vst [vmem:[%s5646_s7 + $0x18] sm:$0xff] %v2878_v40 }
 0x69b   :  { %v2816_v43 = vpop.f32.mrb[44].mxu1 }
 0x69c   :  { %v2879_v55 = vmul.f32 %v3623_v19, %v2816_v43  ;;  %v2818_v15 = vpop.f32.mrb[45].mxu1  ;;  %v3645_v51 = vpop.eup %3644 }
 0x69e   :  { %2895 = vst [vmem:[%s5646_s7 + $0x20] sm:$0xff] %v2879_v55 }
 0x69f   :  { %v2821_v3 = vpop.f32.mrb[46].mxu1 }
 0x6a0   :  { %v2880_v52 = vmul.f32 %v3625_v47, %v2821_v3  ;;  %v2823_v63 = vpop.f32.mrb[47].mxu1 }
 0x6a2   :  { %2896 = vst [vmem:[%s5646_s7 + $0x28] sm:$0xff] %v2880_v52 }
 0x6a3   :  { %v2826_v0 = vpop.f32.mrb[48].mxu1 }
 0x6a4   :  { %v2881_v4 = vmul.f32 %v3627_v2, %v2826_v0  ;;  %v2828_v35 = vpop.f32.mrb[49].mxu1 }
 0x6a6   :  { %2897 = vst [vmem:[%s5646_s7 + $0x30] sm:$0xff] %v2881_v4 }
 0x6a7   :  { %v2831_v11 = vpop.f32.mrb[50].mxu1 }
 0x6a8   :  { %v2882_v6 = vmul.f32 %v3629_v26, %v2831_v11  ;;  %v2833_v62 = vpop.f32.mrb[51].mxu1 }
 0x6aa   :  { %2898 = vst [vmem:[%s5646_s7 + $0x38] sm:$0xff] %v2882_v6 }
 0x6ab   :  { %v2836_v50 = vpop.f32.mrb[52].mxu1 }
 0x6ac   :  { %v2883_v30 = vmul.f32 %v3631_v39, %v2836_v50  ;;  %v2838_v60 = vpop.f32.mrb[53].mxu1 }
 0x6ae   :  { %2899 = vst [vmem:[%s5646_s7 + $0x40] sm:$0xff] %v2883_v30 }
 0x6af   :  { %v2841_v13 = vpop.f32.mrb[54].mxu1 }
 0x6b0   :  { %v2884_v21 = vmul.f32 %v3633_v14, %v2841_v13  ;;  %v2843_v17 = vpop.f32.mrb[55].mxu1 }
 0x6b2   :  { %2900 = vst [vmem:[%s5646_s7 + $0x48] sm:$0xff] %v2884_v21 }
 0x6b3   :  { %v2846_v58 = vpop.f32.mrb[56].mxu1 }
 0x6b4   :  { %v2885_v20 = vmul.f32 %v3635_v28, %v2846_v58  ;;  %v2848_v23 = vpop.f32.mrb[57].mxu1 }
 0x6b6   :  { %2901 = vst [vmem:[%s5646_s7 + $0x50] sm:$0xff] %v2885_v20 }
 0x6b7   :  { %v2851_v57 = vpop.f32.mrb[58].mxu1 }
 0x6b8   :  { %v2886_v7 = vmul.f32 %v3637_v29, %v2851_v57  ;;  %v2853_v34 = vpop.f32.mrb[59].mxu1 }
 0x6ba   :  { %2902 = vst [vmem:[%s5646_s7 + $0x58] sm:$0xff] %v2886_v7 }
 0x6bb   :  { %v2856_v46 = vpop.f32.mrb[60].mxu1 }
 0x6bc   :  { %v2887_v27 = vmul.f32 %v3639_v10, %v2856_v46  ;;  %v2858_v56 = vpop.f32.mrb[61].mxu1 }
 0x6be   :  { %2903 = vst [vmem:[%s5646_s7 + $0x60] sm:$0xff] %v2887_v27 }
 0x6bf   :  { %v2861_v42 = vpop.f32.mrb[62].mxu1 }
 0x6c0   :  { %v2888_v37 = vmul.f32 %v3641_v31, %v2861_v42  ;;  %v2863_v12 = vpop.f32.mrb[63].mxu1 }
 0x6c2   :  { %2904 = vst [vmem:[%s5646_s7 + $0x68] sm:$0xff] %v2888_v37 }
 0x6c3   :  { %v2866_v48 = vpop.f32.mrb[64].mxu1 }
 0x6c4   :  { %v2889_v49 = vmul.f32 %v3643_v61, %v2866_v48  ;;  %v2868_v45 = vpop.f32.mrb[65].mxu1 }
 0x6c6   :  { %2905 = vst [vmem:[%s5646_s7 + $0x70] sm:$0xff] %v2889_v49 }
 0x6c7   :  { %v2871_v40 = vpop.f32.mrb[66].mxu1 }
 0x6c8   :  { %v2890_v53 = vmul.f32 %v3645_v51, %v2871_v40  ;;  %v2873_v24 = vpop.f32.mrb[67].mxu1 }
 0x6ca   :  { %2906 = vst [vmem:[%s5646_s7 + $0x78] sm:$0xff] %v2890_v53 }

</bundles_post_ra>
